<compile_context>
chip_gen: v5e
topology: v5e:2x2
jax: 0.10.0
libtpu: 0.0.40
codegen_flags: <defaults>
</compile_context>

<pallas_src>
import functools

import jax
import jax.numpy as jnp
from jax.experimental import pallas as pl
from jax.experimental.pallas import tpu as pltpu

LANES = 128  # vreg lane width; each gate slab is padded to this


# ---------------------------------------------------------------------------
# Fused kernel: bidirectional LSTM recurrence + FC + LogSoftmax + NLL (mean).
# All operands resident in VMEM, single invocation, no grid.
# ---------------------------------------------------------------------------
def bilstm_classifier_kernel(xg_ref, whh_ref, h0_ref, c0_ref,
                             wfc_ref, bfc_ref, onehot_ref,
                             logp_ref, loss_ref,
                             *, T, Bp, S, nvalid):
    G = 4 * S

    h = h0_ref[...]          # (Bp, S)  lanes: [h_f | h_b | 0-pad]
    c = c0_ref[...]          # (Bp, S)
    whh = whh_ref[...]       # (S, G)   block-diagonal, slab layout

    # tanh (g slab) vs sigmoid (i/f/o slabs) lane mask, hoisted out of the loop.
    lane = jax.lax.broadcasted_iota(jnp.int32, (Bp, G), 1)
    is_g = (lane >= 2 * S) & (lane < 3 * S)

    # T is static and small -> fully-unrolled serial recurrence (fwd+bwd fused).
    for t in range(T):
        gates = xg_ref[pl.ds(t * Bp, Bp), :] + jnp.dot(
            h, whh, preferred_element_type=jnp.float32)
        # single EUP pass: sigmoid(x) = 0.5 * (tanh(x/2) + 1)
        th = jnp.tanh(jnp.where(is_g, gates, 0.5 * gates))
        act = jnp.where(is_g, th, 0.5 * th + 0.5)
        i = act[:, 0 * S:1 * S]          # full 128-lane, vreg-aligned slabs
        f = act[:, 1 * S:2 * S]
        g = act[:, 2 * S:3 * S]
        o = act[:, 3 * S:4 * S]
        c = f * c + i * g
        h = o * jnp.tanh(c)

    # h == cat(ht[0], ht[1], dim=1) in lanes [0:2H]; pad lanes stay zero.
    # Dropout(p=0.3) is identity in eval mode.
    z = jnp.dot(h, wfc_ref[...], preferred_element_type=jnp.float32) + bfc_ref[...]
    m = jnp.max(z, axis=-1, keepdims=True)
    lse = m + jnp.log(jnp.sum(jnp.exp(z - m), axis=-1, keepdims=True))
    logp = z - lse
    logp_ref[...] = logp
    # NLLLoss(mean) over the real batch rows (padded one-hot rows are zero).
    loss_ref[0, 0] = -jnp.sum(logp * onehot_ref[...]) / jnp.float32(nvalid)


# ---------------------------------------------------------------------------
# Weight fusion: PyTorch-order per-direction weights -> lane-aligned slabs.
# Slab layout (width S each): [ i_f i_b 0 | f_f f_b 0 | g_f g_b 0 | o_f o_b 0 ]
# ---------------------------------------------------------------------------
def _place_gate_slabs(a_f, a_b, H, S):
    # a_f, a_b: (..., 4H) with PyTorch gate blocks [i|f|g|o]  ->  (..., 4S)
    pad = jnp.zeros(a_f.shape[:-1] + (S - 2 * H,), a_f.dtype)
    parts = []
    for k in range(4):
        parts += [a_f[..., k * H:(k + 1) * H], a_b[..., k * H:(k + 1) * H], pad]
    return jnp.concatenate(parts, axis=-1)


def _fuse_weights(params, S):
    H = params["hidden_dim"]
    C = params["w_fc"].shape[-1]
    z4h = jnp.zeros_like(params["whh_f"])
    wih = _place_gate_slabs(params["wih_f"], params["wih_b"], H, S)   # (E, 4S)
    bih = _place_gate_slabs(params["b_f"], params["b_b"], H, S)       # (1, 4S)
    whh = jnp.concatenate(
        [_place_gate_slabs(params["whh_f"], z4h, H, S),               # h_f rows
         _place_gate_slabs(z4h, params["whh_b"], H, S),               # h_b rows
         jnp.zeros((S - 2 * H, 4 * S), jnp.float32)],                 # pad rows
        axis=0)                                                       # (S, 4S)
    wfc = jnp.concatenate(
        [params["w_fc"], jnp.zeros((S - 2 * H, C), jnp.float32)], axis=0)  # (S, C)
    return wih, bih, whh, wfc


# ---------------------------------------------------------------------------
# Full forward pass (mirrors LSTMClassifier.forward with NLLLoss criterion).
# ---------------------------------------------------------------------------
def lstm_classifier_forward(params, batch_tokens, targets, hidden_key):
    B, T = batch_tokens.shape
    H = params["hidden_dim"]
    C = params["w_fc"].shape[-1]
    S = LANES
    assert 2 * H <= S, "hidden packing assumes 2*H <= 128 lanes"
    Bp = ((B + 7) // 8) * 8          # pad batch to full sublanes
    G = 4 * S

    def pad_batch(x):
        return x if Bp == B else jnp.pad(
            x, ((0, Bp - B),) + ((0, 0),) * (x.ndim - 1))

    # self.init_hidden(batch_size): torch.randn(2, B, H) x2 (deterministic key)
    k_h, k_c = jax.random.split(hidden_key)
    h0 = jax.random.normal(k_h, (2, B, H), jnp.float32)
    c0 = jax.random.normal(k_c, (2, B, H), jnp.float32)

    def pack_state(s):
        s = jnp.concatenate([s[0], s[1]], axis=-1)        # (B, 2H) = [f | b]
        s = jnp.pad(s, ((0, 0), (0, S - 2 * H)))          # (B, S)
        return pad_batch(s)                               # (Bp, S)

    h0p, c0p = pack_state(h0), pack_state(c0)

    wih, bih, whh, wfc = _fuse_weights(params, S)

    # Fold embedding lookup + x @ W_ih + bias into ONE pre-projected table,
    # gather per token, and merge fwd/bwd time order once (all off the serial
    # critical path, plain JAX).
    proj_table = jnp.dot(params["embedding"], wih) + bih            # (V, G)
    xg = proj_table[batch_tokens]                                   # (B, T, G)
    xg = jnp.transpose(pad_batch(xg), (1, 0, 2))                    # (T, Bp, G)
    col_is_fwd = (jnp.arange(G) % S) < H
    xg_merged = jnp.where(col_is_fwd[None, None, :], xg, xg[::-1])  # bwd <- T-1-t
    xg_flat = xg_merged.reshape(T * Bp, G)

    onehot = pad_batch(jax.nn.one_hot(targets, C, dtype=jnp.float32))

    vmem = pl.BlockSpec(memory_space=pltpu.MemorySpace.VMEM)
    smem = pl.BlockSpec(memory_space=pltpu.MemorySpace.SMEM)

    logp_pad, loss = pl.pallas_call(
        functools.partial(bilstm_classifier_kernel,
                          T=T, Bp=Bp, S=S, nvalid=B),
        out_shape=(jax.ShapeDtypeStruct((Bp, C), jnp.float32),
                   jax.ShapeDtypeStruct((1, 1), jnp.float32)),
        in_specs=[vmem] * 7,
        out_specs=(vmem, smem),
        compiler_params=pltpu.CompilerParams(
            vmem_limit_bytes=32 * 1024 * 1024),
    )(xg_flat, whh, h0p, c0p, wfc, params["b_fc"], onehot)

    # dropout(p=0.3): identity in eval mode.
    # TODO(synk): training-mode stochastic dropout (pltpu PRNG mask) not implemented.
    return logp_pad[:B], loss[0, 0]


def init_params(key, vocab_size, embedding_dim, hidden_dim, classes):
    E, H, C = embedding_dim, hidden_dim, classes
    ks = jax.random.split(key, 12)
    s = 1.0 / jnp.sqrt(jnp.float32(H))
    u = lambda k, shp: jax.random.uniform(k, shp, jnp.float32, -s, s)
    return {
        "hidden_dim": H,
        "embedding": jax.random.normal(ks[0], (vocab_size, E), jnp.float32),
        # PyTorch LSTM weights are (4H, E)/(4H, H); stored pre-transposed,
        # gate order [i, f, g, o].
        "wih_f": u(ks[1], (E, 4 * H)),
        "whh_f": u(ks[2], (H, 4 * H)),
        "b_f":   u(ks[3], (1, 4 * H)) + u(ks[4], (1, 4 * H)),  # b_ih + b_hh
        "wih_b": u(ks[5], (E, 4 * H)),
        "whh_b": u(ks[6], (H, 4 * H)),
        "b_b":   u(ks[7], (1, 4 * H)) + u(ks[8], (1, 4 * H)),
        # fc: (C, 2H) stored transposed as (2H, C), bias (1, C)
        "w_fc":  u(ks[9], (2 * H, C)),
        "b_fc":  u(ks[10], (1, C)),
    }


if __name__ == "__main__":
    VOCAB, E, H, C = 50, 16, 32, 4
    B, T = 4, 8

    root = jax.random.PRNGKey(0)
    k_param, k_tok, k_tgt, k_hid = jax.random.split(root, 4)

    params = init_params(k_param, VOCAB, E, H, C)
    batch_tokens = jax.random.randint(k_tok, (B, T), 0, VOCAB, dtype=jnp.int32)
    targets = jax.random.randint(k_tgt, (B,), 0, C, dtype=jnp.int32)

    logp, loss = lstm_classifier_forward(params, batch_tokens, targets, k_hid)
    jax.block_until_ready((logp, loss))

    assert logp.shape == (B, C)
    assert jnp.isfinite(loss)
    # rows of log-softmax should sum to ~1 in prob space
    assert jnp.allclose(jnp.sum(jnp.exp(logp), axis=1), 1.0, atol=1e-4)
    print("KERNEL_OK")
</pallas_src>

<mosaic_0001>
module attributes {stable_mosaic.version = 11 : i64} {
  func.func @bilstm_classifier_kernel(%arg0: memref<64x512xf32, #tpu.memory_space<vmem>>, %arg1: memref<128x512xf32, #tpu.memory_space<vmem>>, %arg2: memref<8x128xf32, #tpu.memory_space<vmem>>, %arg3: memref<8x128xf32, #tpu.memory_space<vmem>>, %arg4: memref<128x4xf32, #tpu.memory_space<vmem>>, %arg5: memref<1x4xf32, #tpu.memory_space<vmem>>, %arg6: memref<8x4xf32, #tpu.memory_space<vmem>>, %arg7: memref<8x4xf32, #tpu.memory_space<vmem>>, %arg8: memref<1x1xf32, #tpu.memory_space<smem>>) attributes {dimension_semantics = [], scalar_prefetch = 0 : i64, scratch_operands = 0 : i64, tpu.core_type = #tpu.core_type<tc>} {
    %c0 = arith.constant 0 : index
    %c0_0 = arith.constant 0 : index
    %0 = vector.load %arg2[%c0, %c0_0] : memref<8x128xf32, #tpu.memory_space<vmem>>, vector<8x128xf32>
    %c0_1 = arith.constant 0 : index
    %c0_2 = arith.constant 0 : index
    %1 = vector.load %arg3[%c0_1, %c0_2] : memref<8x128xf32, #tpu.memory_space<vmem>>, vector<8x128xf32>
    %c0_3 = arith.constant 0 : index
    %c0_4 = arith.constant 0 : index
    %2 = vector.load %arg1[%c0_3, %c0_4] : memref<128x512xf32, #tpu.memory_space<vmem>>, vector<128x512xf32>
    %3 = tpu.iota {dimensions = array<i32: 1>} : vector<8x512xi32>
    %c256_i32 = arith.constant 256 : i32
    %4 = vector.broadcast %c256_i32 : i32 to vector<8x512xi32>
    %5 = arith.cmpi sge, %3, %4 : vector<8x512xi32>
    %c384_i32 = arith.constant 384 : i32
    %6 = vector.broadcast %c384_i32 : i32 to vector<8x512xi32>
    %7 = arith.cmpi slt, %3, %6 : vector<8x512xi32>
    %8 = arith.andi %5, %7 : vector<8x512xi1>
    %c0_5 = arith.constant 0 : index
    %c0_6 = arith.constant 0 : index
    %9 = vector.load %arg0[%c0_5, %c0_6] : memref<64x512xf32, #tpu.memory_space<vmem>>, vector<8x512xf32>
    %cst = arith.constant dense<0.000000e+00> : vector<8x512xf32>
    %10 = tpu.matmul %0, %2, %cst {dimension_numbers = #tpu.dot_dimension_numbers<[1], [0], [0], [1], [0, 0, 1, 1], [], []>} : vector<8x128xf32>, vector<128x512xf32>, vector<8x512xf32> -> vector<8x512xf32>
    %11 = arith.addf %9, %10 : vector<8x512xf32>
    %cst_7 = arith.constant 5.000000e-01 : f32
    %12 = vector.broadcast %cst_7 : f32 to vector<8x512xf32>
    %13 = arith.mulf %12, %11 : vector<8x512xf32>
    %14 = arith.select %8, %11, %13 : vector<8x512xi1>, vector<8x512xf32>
    %15 = math.tanh %14 : vector<8x512xf32>
    %cst_8 = arith.constant 5.000000e-01 : f32
    %16 = vector.broadcast %cst_8 : f32 to vector<8x512xf32>
    %17 = arith.mulf %16, %15 : vector<8x512xf32>
    %cst_9 = arith.constant 5.000000e-01 : f32
    %18 = vector.broadcast %cst_9 : f32 to vector<8x512xf32>
    %19 = arith.addf %17, %18 : vector<8x512xf32>
    %20 = arith.select %8, %15, %19 : vector<8x512xi1>, vector<8x512xf32>
    %21 = vector.extract_strided_slice %20 {offsets = [0, 0], sizes = [8, 128], strides = [1, 1]} : vector<8x512xf32> to vector<8x128xf32>
    %22 = vector.extract_strided_slice %20 {offsets = [0, 128], sizes = [8, 128], strides = [1, 1]} : vector<8x512xf32> to vector<8x128xf32>
    %23 = vector.extract_strided_slice %20 {offsets = [0, 256], sizes = [8, 128], strides = [1, 1]} : vector<8x512xf32> to vector<8x128xf32>
    %24 = vector.extract_strided_slice %20 {offsets = [0, 384], sizes = [8, 128], strides = [1, 1]} : vector<8x512xf32> to vector<8x128xf32>
    %25 = arith.mulf %22, %1 : vector<8x128xf32>
    %26 = arith.mulf %21, %23 : vector<8x128xf32>
    %27 = arith.addf %25, %26 : vector<8x128xf32>
    %28 = math.tanh %27 : vector<8x128xf32>
    %29 = arith.mulf %24, %28 : vector<8x128xf32>
    %c8 = arith.constant 8 : index
    %c0_10 = arith.constant 0 : index
    %30 = vector.load %arg0[%c8, %c0_10] : memref<64x512xf32, #tpu.memory_space<vmem>>, vector<8x512xf32>
    %cst_11 = arith.constant dense<0.000000e+00> : vector<8x512xf32>
    %31 = tpu.matmul %29, %2, %cst_11 {dimension_numbers = #tpu.dot_dimension_numbers<[1], [0], [0], [1], [0, 0, 1, 1], [], []>} : vector<8x128xf32>, vector<128x512xf32>, vector<8x512xf32> -> vector<8x512xf32>
    %32 = arith.addf %30, %31 : vector<8x512xf32>
    %cst_12 = arith.constant 5.000000e-01 : f32
    %33 = vector.broadcast %cst_12 : f32 to vector<8x512xf32>
    %34 = arith.mulf %33, %32 : vector<8x512xf32>
    %35 = arith.select %8, %32, %34 : vector<8x512xi1>, vector<8x512xf32>
    %36 = math.tanh %35 : vector<8x512xf32>
    %cst_13 = arith.constant 5.000000e-01 : f32
    %37 = vector.broadcast %cst_13 : f32 to vector<8x512xf32>
    %38 = arith.mulf %37, %36 : vector<8x512xf32>
    %cst_14 = arith.constant 5.000000e-01 : f32
    %39 = vector.broadcast %cst_14 : f32 to vector<8x512xf32>
    %40 = arith.addf %38, %39 : vector<8x512xf32>
    %41 = arith.select %8, %36, %40 : vector<8x512xi1>, vector<8x512xf32>
    %42 = vector.extract_strided_slice %41 {offsets = [0, 0], sizes = [8, 128], strides = [1, 1]} : vector<8x512xf32> to vector<8x128xf32>
    %43 = vector.extract_strided_slice %41 {offsets = [0, 128], sizes = [8, 128], strides = [1, 1]} : vector<8x512xf32> to vector<8x128xf32>
    %44 = vector.extract_strided_slice %41 {offsets = [0, 256], sizes = [8, 128], strides = [1, 1]} : vector<8x512xf32> to vector<8x128xf32>
    %45 = vector.extract_strided_slice %41 {offsets = [0, 384], sizes = [8, 128], strides = [1, 1]} : vector<8x512xf32> to vector<8x128xf32>
    %46 = arith.mulf %43, %27 : vector<8x128xf32>
    %47 = arith.mulf %42, %44 : vector<8x128xf32>
    %48 = arith.addf %46, %47 : vector<8x128xf32>
    %49 = math.tanh %48 : vector<8x128xf32>
    %50 = arith.mulf %45, %49 : vector<8x128xf32>
    %c16 = arith.constant 16 : index
    %c0_15 = arith.constant 0 : index
    %51 = vector.load %arg0[%c16, %c0_15] : memref<64x512xf32, #tpu.memory_space<vmem>>, vector<8x512xf32>
    %cst_16 = arith.constant dense<0.000000e+00> : vector<8x512xf32>
    %52 = tpu.matmul %50, %2, %cst_16 {dimension_numbers = #tpu.dot_dimension_numbers<[1], [0], [0], [1], [0, 0, 1, 1], [], []>} : vector<8x128xf32>, vector<128x512xf32>, vector<8x512xf32> -> vector<8x512xf32>
    %53 = arith.addf %51, %52 : vector<8x512xf32>
    %cst_17 = arith.constant 5.000000e-01 : f32
    %54 = vector.broadcast %cst_17 : f32 to vector<8x512xf32>
    %55 = arith.mulf %54, %53 : vector<8x512xf32>
    %56 = arith.select %8, %53, %55 : vector<8x512xi1>, vector<8x512xf32>
    %57 = math.tanh %56 : vector<8x512xf32>
    %cst_18 = arith.constant 5.000000e-01 : f32
    %58 = vector.broadcast %cst_18 : f32 to vector<8x512xf32>
    %59 = arith.mulf %58, %57 : vector<8x512xf32>
    %cst_19 = arith.constant 5.000000e-01 : f32
    %60 = vector.broadcast %cst_19 : f32 to vector<8x512xf32>
    %61 = arith.addf %59, %60 : vector<8x512xf32>
    %62 = arith.select %8, %57, %61 : vector<8x512xi1>, vector<8x512xf32>
    %63 = vector.extract_strided_slice %62 {offsets = [0, 0], sizes = [8, 128], strides = [1, 1]} : vector<8x512xf32> to vector<8x128xf32>
    %64 = vector.extract_strided_slice %62 {offsets = [0, 128], sizes = [8, 128], strides = [1, 1]} : vector<8x512xf32> to vector<8x128xf32>
    %65 = vector.extract_strided_slice %62 {offsets = [0, 256], sizes = [8, 128], strides = [1, 1]} : vector<8x512xf32> to vector<8x128xf32>
    %66 = vector.extract_strided_slice %62 {offsets = [0, 384], sizes = [8, 128], strides = [1, 1]} : vector<8x512xf32> to vector<8x128xf32>
    %67 = arith.mulf %64, %48 : vector<8x128xf32>
    %68 = arith.mulf %63, %65 : vector<8x128xf32>
    %69 = arith.addf %67, %68 : vector<8x128xf32>
    %70 = math.tanh %69 : vector<8x128xf32>
    %71 = arith.mulf %66, %70 : vector<8x128xf32>
    %c24 = arith.constant 24 : index
    %c0_20 = arith.constant 0 : index
    %72 = vector.load %arg0[%c24, %c0_20] : memref<64x512xf32, #tpu.memory_space<vmem>>, vector<8x512xf32>
    %cst_21 = arith.constant dense<0.000000e+00> : vector<8x512xf32>
    %73 = tpu.matmul %71, %2, %cst_21 {dimension_numbers = #tpu.dot_dimension_numbers<[1], [0], [0], [1], [0, 0, 1, 1], [], []>} : vector<8x128xf32>, vector<128x512xf32>, vector<8x512xf32> -> vector<8x512xf32>
    %74 = arith.addf %72, %73 : vector<8x512xf32>
    %cst_22 = arith.constant 5.000000e-01 : f32
    %75 = vector.broadcast %cst_22 : f32 to vector<8x512xf32>
    %76 = arith.mulf %75, %74 : vector<8x512xf32>
    %77 = arith.select %8, %74, %76 : vector<8x512xi1>, vector<8x512xf32>
    %78 = math.tanh %77 : vector<8x512xf32>
    %cst_23 = arith.constant 5.000000e-01 : f32
    %79 = vector.broadcast %cst_23 : f32 to vector<8x512xf32>
    %80 = arith.mulf %79, %78 : vector<8x512xf32>
    %cst_24 = arith.constant 5.000000e-01 : f32
    %81 = vector.broadcast %cst_24 : f32 to vector<8x512xf32>
    %82 = arith.addf %80, %81 : vector<8x512xf32>
    %83 = arith.select %8, %78, %82 : vector<8x512xi1>, vector<8x512xf32>
    %84 = vector.extract_strided_slice %83 {offsets = [0, 0], sizes = [8, 128], strides = [1, 1]} : vector<8x512xf32> to vector<8x128xf32>
    %85 = vector.extract_strided_slice %83 {offsets = [0, 128], sizes = [8, 128], strides = [1, 1]} : vector<8x512xf32> to vector<8x128xf32>
    %86 = vector.extract_strided_slice %83 {offsets = [0, 256], sizes = [8, 128], strides = [1, 1]} : vector<8x512xf32> to vector<8x128xf32>
    %87 = vector.extract_strided_slice %83 {offsets = [0, 384], sizes = [8, 128], strides = [1, 1]} : vector<8x512xf32> to vector<8x128xf32>
    %88 = arith.mulf %85, %69 : vector<8x128xf32>
    %89 = arith.mulf %84, %86 : vector<8x128xf32>
    %90 = arith.addf %88, %89 : vector<8x128xf32>
    %91 = math.tanh %90 : vector<8x128xf32>
    %92 = arith.mulf %87, %91 : vector<8x128xf32>
    %c32 = arith.constant 32 : index
    %c0_25 = arith.constant 0 : index
    %93 = vector.load %arg0[%c32, %c0_25] : memref<64x512xf32, #tpu.memory_space<vmem>>, vector<8x512xf32>
    %cst_26 = arith.constant dense<0.000000e+00> : vector<8x512xf32>
    %94 = tpu.matmul %92, %2, %cst_26 {dimension_numbers = #tpu.dot_dimension_numbers<[1], [0], [0], [1], [0, 0, 1, 1], [], []>} : vector<8x128xf32>, vector<128x512xf32>, vector<8x512xf32> -> vector<8x512xf32>
    %95 = arith.addf %93, %94 : vector<8x512xf32>
    %cst_27 = arith.constant 5.000000e-01 : f32
    %96 = vector.broadcast %cst_27 : f32 to vector<8x512xf32>
    %97 = arith.mulf %96, %95 : vector<8x512xf32>
    %98 = arith.select %8, %95, %97 : vector<8x512xi1>, vector<8x512xf32>
    %99 = math.tanh %98 : vector<8x512xf32>
    %cst_28 = arith.constant 5.000000e-01 : f32
    %100 = vector.broadcast %cst_28 : f32 to vector<8x512xf32>
    %101 = arith.mulf %100, %99 : vector<8x512xf32>
    %cst_29 = arith.constant 5.000000e-01 : f32
    %102 = vector.broadcast %cst_29 : f32 to vector<8x512xf32>
    %103 = arith.addf %101, %102 : vector<8x512xf32>
    %104 = arith.select %8, %99, %103 : vector<8x512xi1>, vector<8x512xf32>
    %105 = vector.extract_strided_slice %104 {offsets = [0, 0], sizes = [8, 128], strides = [1, 1]} : vector<8x512xf32> to vector<8x128xf32>
    %106 = vector.extract_strided_slice %104 {offsets = [0, 128], sizes = [8, 128], strides = [1, 1]} : vector<8x512xf32> to vector<8x128xf32>
    %107 = vector.extract_strided_slice %104 {offsets = [0, 256], sizes = [8, 128], strides = [1, 1]} : vector<8x512xf32> to vector<8x128xf32>
    %108 = vector.extract_strided_slice %104 {offsets = [0, 384], sizes = [8, 128], strides = [1, 1]} : vector<8x512xf32> to vector<8x128xf32>
    %109 = arith.mulf %106, %90 : vector<8x128xf32>
    %110 = arith.mulf %105, %107 : vector<8x128xf32>
    %111 = arith.addf %109, %110 : vector<8x128xf32>
    %112 = math.tanh %111 : vector<8x128xf32>
    %113 = arith.mulf %108, %112 : vector<8x128xf32>
    %c40 = arith.constant 40 : index
    %c0_30 = arith.constant 0 : index
    %114 = vector.load %arg0[%c40, %c0_30] : memref<64x512xf32, #tpu.memory_space<vmem>>, vector<8x512xf32>
    %cst_31 = arith.constant dense<0.000000e+00> : vector<8x512xf32>
    %115 = tpu.matmul %113, %2, %cst_31 {dimension_numbers = #tpu.dot_dimension_numbers<[1], [0], [0], [1], [0, 0, 1, 1], [], []>} : vector<8x128xf32>, vector<128x512xf32>, vector<8x512xf32> -> vector<8x512xf32>
    %116 = arith.addf %114, %115 : vector<8x512xf32>
    %cst_32 = arith.constant 5.000000e-01 : f32
    %117 = vector.broadcast %cst_32 : f32 to vector<8x512xf32>
    %118 = arith.mulf %117, %116 : vector<8x512xf32>
    %119 = arith.select %8, %116, %118 : vector<8x512xi1>, vector<8x512xf32>
    %120 = math.tanh %119 : vector<8x512xf32>
    %cst_33 = arith.constant 5.000000e-01 : f32
    %121 = vector.broadcast %cst_33 : f32 to vector<8x512xf32>
    %122 = arith.mulf %121, %120 : vector<8x512xf32>
    %cst_34 = arith.constant 5.000000e-01 : f32
    %123 = vector.broadcast %cst_34 : f32 to vector<8x512xf32>
    %124 = arith.addf %122, %123 : vector<8x512xf32>
    %125 = arith.select %8, %120, %124 : vector<8x512xi1>, vector<8x512xf32>
    %126 = vector.extract_strided_slice %125 {offsets = [0, 0], sizes = [8, 128], strides = [1, 1]} : vector<8x512xf32> to vector<8x128xf32>
    %127 = vector.extract_strided_slice %125 {offsets = [0, 128], sizes = [8, 128], strides = [1, 1]} : vector<8x512xf32> to vector<8x128xf32>
    %128 = vector.extract_strided_slice %125 {offsets = [0, 256], sizes = [8, 128], strides = [1, 1]} : vector<8x512xf32> to vector<8x128xf32>
    %129 = vector.extract_strided_slice %125 {offsets = [0, 384], sizes = [8, 128], strides = [1, 1]} : vector<8x512xf32> to vector<8x128xf32>
    %130 = arith.mulf %127, %111 : vector<8x128xf32>
    %131 = arith.mulf %126, %128 : vector<8x128xf32>
    %132 = arith.addf %130, %131 : vector<8x128xf32>
    %133 = math.tanh %132 : vector<8x128xf32>
    %134 = arith.mulf %129, %133 : vector<8x128xf32>
    %c48 = arith.constant 48 : index
    %c0_35 = arith.constant 0 : index
    %135 = vector.load %arg0[%c48, %c0_35] : memref<64x512xf32, #tpu.memory_space<vmem>>, vector<8x512xf32>
    %cst_36 = arith.constant dense<0.000000e+00> : vector<8x512xf32>
    %136 = tpu.matmul %134, %2, %cst_36 {dimension_numbers = #tpu.dot_dimension_numbers<[1], [0], [0], [1], [0, 0, 1, 1], [], []>} : vector<8x128xf32>, vector<128x512xf32>, vector<8x512xf32> -> vector<8x512xf32>
    %137 = arith.addf %135, %136 : vector<8x512xf32>
    %cst_37 = arith.constant 5.000000e-01 : f32
    %138 = vector.broadcast %cst_37 : f32 to vector<8x512xf32>
    %139 = arith.mulf %138, %137 : vector<8x512xf32>
    %140 = arith.select %8, %137, %139 : vector<8x512xi1>, vector<8x512xf32>
    %141 = math.tanh %140 : vector<8x512xf32>
    %cst_38 = arith.constant 5.000000e-01 : f32
    %142 = vector.broadcast %cst_38 : f32 to vector<8x512xf32>
    %143 = arith.mulf %142, %141 : vector<8x512xf32>
    %cst_39 = arith.constant 5.000000e-01 : f32
    %144 = vector.broadcast %cst_39 : f32 to vector<8x512xf32>
    %145 = arith.addf %143, %144 : vector<8x512xf32>
    %146 = arith.select %8, %141, %145 : vector<8x512xi1>, vector<8x512xf32>
    %147 = vector.extract_strided_slice %146 {offsets = [0, 0], sizes = [8, 128], strides = [1, 1]} : vector<8x512xf32> to vector<8x128xf32>
    %148 = vector.extract_strided_slice %146 {offsets = [0, 128], sizes = [8, 128], strides = [1, 1]} : vector<8x512xf32> to vector<8x128xf32>
    %149 = vector.extract_strided_slice %146 {offsets = [0, 256], sizes = [8, 128], strides = [1, 1]} : vector<8x512xf32> to vector<8x128xf32>
    %150 = vector.extract_strided_slice %146 {offsets = [0, 384], sizes = [8, 128], strides = [1, 1]} : vector<8x512xf32> to vector<8x128xf32>
    %151 = arith.mulf %148, %132 : vector<8x128xf32>
    %152 = arith.mulf %147, %149 : vector<8x128xf32>
    %153 = arith.addf %151, %152 : vector<8x128xf32>
    %154 = math.tanh %153 : vector<8x128xf32>
    %155 = arith.mulf %150, %154 : vector<8x128xf32>
    %c56 = arith.constant 56 : index
    %c0_40 = arith.constant 0 : index
    %156 = vector.load %arg0[%c56, %c0_40] : memref<64x512xf32, #tpu.memory_space<vmem>>, vector<8x512xf32>
    %cst_41 = arith.constant dense<0.000000e+00> : vector<8x512xf32>
    %157 = tpu.matmul %155, %2, %cst_41 {dimension_numbers = #tpu.dot_dimension_numbers<[1], [0], [0], [1], [0, 0, 1, 1], [], []>} : vector<8x128xf32>, vector<128x512xf32>, vector<8x512xf32> -> vector<8x512xf32>
    %158 = arith.addf %156, %157 : vector<8x512xf32>
    %cst_42 = arith.constant 5.000000e-01 : f32
    %159 = vector.broadcast %cst_42 : f32 to vector<8x512xf32>
    %160 = arith.mulf %159, %158 : vector<8x512xf32>
    %161 = arith.select %8, %158, %160 : vector<8x512xi1>, vector<8x512xf32>
    %162 = math.tanh %161 : vector<8x512xf32>
    %cst_43 = arith.constant 5.000000e-01 : f32
    %163 = vector.broadcast %cst_43 : f32 to vector<8x512xf32>
    %164 = arith.mulf %163, %162 : vector<8x512xf32>
    %cst_44 = arith.constant 5.000000e-01 : f32
    %165 = vector.broadcast %cst_44 : f32 to vector<8x512xf32>
    %166 = arith.addf %164, %165 : vector<8x512xf32>
    %167 = arith.select %8, %162, %166 : vector<8x512xi1>, vector<8x512xf32>
    %168 = vector.extract_strided_slice %167 {offsets = [0, 0], sizes = [8, 128], strides = [1, 1]} : vector<8x512xf32> to vector<8x128xf32>
    %169 = vector.extract_strided_slice %167 {offsets = [0, 128], sizes = [8, 128], strides = [1, 1]} : vector<8x512xf32> to vector<8x128xf32>
    %170 = vector.extract_strided_slice %167 {offsets = [0, 256], sizes = [8, 128], strides = [1, 1]} : vector<8x512xf32> to vector<8x128xf32>
    %171 = vector.extract_strided_slice %167 {offsets = [0, 384], sizes = [8, 128], strides = [1, 1]} : vector<8x512xf32> to vector<8x128xf32>
    %172 = arith.mulf %169, %153 : vector<8x128xf32>
    %173 = arith.mulf %168, %170 : vector<8x128xf32>
    %174 = arith.addf %172, %173 : vector<8x128xf32>
    %175 = math.tanh %174 : vector<8x128xf32>
    %176 = arith.mulf %171, %175 : vector<8x128xf32>
    %c0_45 = arith.constant 0 : index
    %c0_46 = arith.constant 0 : index
    %177 = vector.load %arg4[%c0_45, %c0_46] : memref<128x4xf32, #tpu.memory_space<vmem>>, vector<128x4xf32>
    %cst_47 = arith.constant dense<0.000000e+00> : vector<8x4xf32>
    %178 = tpu.matmul %176, %177, %cst_47 {dimension_numbers = #tpu.dot_dimension_numbers<[1], [0], [0], [1], [0, 0, 1, 1], [], []>} : vector<8x128xf32>, vector<128x4xf32>, vector<8x4xf32> -> vector<8x4xf32>
    %c0_48 = arith.constant 0 : index
    %c0_49 = arith.constant 0 : index
    %179 = vector.load %arg5[%c0_48, %c0_49] : memref<1x4xf32, #tpu.memory_space<vmem>>, vector<1x4xf32>
    %180 = vector.broadcast %179 : vector<1x4xf32> to vector<8x4xf32>
    %181 = arith.addf %178, %180 : vector<8x4xf32>
    %cst_50 = arith.constant dense<0xFF800000> : vector<8xf32>
    %182 = vector.multi_reduction <maximumf>, %181, %cst_50 [1] : vector<8x4xf32> to vector<8xf32>
    %183 = vector.shape_cast %182 : vector<8xf32> to vector<8x1xf32>
    %184 = vector.broadcast %183 : vector<8x1xf32> to vector<8x4xf32>
    %185 = arith.subf %181, %184 : vector<8x4xf32>
    %186 = math.exp %185 : vector<8x4xf32>
    %cst_51 = arith.constant dense<0.000000e+00> : vector<8xf32>
    %187 = vector.multi_reduction <add>, %186, %cst_51 [1] : vector<8x4xf32> to vector<8xf32>
    %188 = vector.shape_cast %187 : vector<8xf32> to vector<8x1xf32>
    %189 = math.log %188 : vector<8x1xf32>
    %190 = arith.addf %183, %189 : vector<8x1xf32>
    %191 = vector.broadcast %190 : vector<8x1xf32> to vector<8x4xf32>
    %192 = arith.subf %181, %191 : vector<8x4xf32>
    %c0_52 = arith.constant 0 : index
    %c0_53 = arith.constant 0 : index
    %193 = vector.load %arg7[%c0_52, %c0_53] : memref<8x4xf32, #tpu.memory_space<vmem>>, vector<8x4xf32>
    tpu.vector_store %arg7[%c0_52, %c0_53], %192 {strides = array<i32>} : memref<8x4xf32, #tpu.memory_space<vmem>>, vector<8x4xf32>,
    %c0_54 = arith.constant 0 : index
    %c0_55 = arith.constant 0 : index
    %194 = vector.load %arg6[%c0_54, %c0_55] : memref<8x4xf32, #tpu.memory_space<vmem>>, vector<8x4xf32>
    %195 = arith.mulf %192, %194 : vector<8x4xf32>
    %196 = vector.shape_cast %195 : vector<8x4xf32> to vector<1x8x4xf32>
    %cst_56 = arith.constant dense<0.000000e+00> : vector<1xf32>
    %197 = vector.multi_reduction <add>, %196, %cst_56 [1, 2] : vector<1x8x4xf32> to vector<1xf32>
    %198 = vector.shape_cast %197 : vector<1xf32> to vector<1x1x1xf32>
    %199 = vector.extract %198[0, 0, 0] : f32 from vector<1x1x1xf32>
    %cst_57 = arith.constant 0.000000e+00 : f32
    %200 = arith.subf %cst_57, %199 : f32
    %cst_58 = arith.constant 4.000000e+00 : f32
    %201 = arith.divf %200, %cst_58 : f32
    %c0_59 = arith.constant 0 : index
    %c0_60 = arith.constant 0 : index
    %202 = memref.load %arg8[%c0_59, %c0_60] : memref<1x1xf32, #tpu.memory_space<smem>>
    memref.store %201, %arg8[%c0_59, %c0_60] : memref<1x1xf32, #tpu.memory_space<smem>>
    return
  }
}

</mosaic_0001>

<bundles_post_ra>
// kernel: tpu_custom_call.1
= control target key start
LH: loop header
LB: loop body
LE: loop exit
PB: predicated region body
PF: predicated region fallthrough
CT: control target
= control target key end

     0   :  { %14 = vsyncpa [#allocation3], 0  ;;  %s2326_s0 = inlined_call_operand.hbm [shape: f32[64,512], index: 0, kind: input, shape index: {}]   ;;  %s2327_s1 = inlined_call_operand.hbm [shape: f32[128,512], index: 1, kind: input, shape index: {}]   ;;  %s2328_s2 = inlined_call_operand.vmem [shape: f32[8,128], index: 2, kind: input, shape index: {}]   ;;  %s2329_s3 = inlined_call_operand.vmem [shape: f32[8,128], index: 3, kind: input, shape index: {}]   ;;  %s2330_s4 = inlined_call_operand.vmem [shape: f32[128,4], index: 4, kind: input, shape index: {}]   ;;  %s2331_s5 = inlined_call_operand.vmem [shape: f32[1,4], index: 5, kind: input, shape index: {}]   ;;  %s2332_s6 = inlined_call_operand.vmem [shape: f32[8,4], index: 6, kind: input, shape index: {}]   ;;  %s2333_s7 = inlined_call_operand.vmem [shape: f32[8,4], index: 7, kind: output, shape index: {0}]   ;;  %s2334_s8 = inlined_call_operand.hbm [shape: f32[1,1], index: 8, kind: output, shape index: {1}]  }
   0x1   :  { %15 = vsyncpa [#allocation6], 0 }
   0x2   :  { %16 = vsyncpa [#allocation4], 0  ;;  %s21_s29 = sshll.u32 %s2326_s0, 4  ;;  %s1407_s30 = smov [#allocation2]   ;;  %s22_s29 = int_to_ptr.hbm [resolvable:$true] %s21_s29 }
   0x3   :  { %s23_s9 = sshll.u32 %s1407_s30, 4  ;;  %s34_s12 = sshll.u32 %s2327_s1, 4  ;;  %s24_s9 = int_to_ptr.vmem [resolvable:$true] %s23_s9  ;;  %s35_s12 = int_to_ptr.hbm [resolvable:$true] %s34_s12 }
   0x4   :  { %s1408_s13 = smov 512   ;;  %s1409_s14 = smov 32  }
   0x5   :  { %29 = dma.hbm_to_vmem [thread:$0]  %s22_s29, 4096, %s24_s9, [#allocation3], %s1408_s13, %s1408_s13, %s1409_s14  }
   0x6   :  { %s1410_s15 = smov [#allocation5]  }
   0x7   :  { %s36_s16 = sshll.u32 %s1410_s15, 4  ;;  %s37_s16 = int_to_ptr.vmem [resolvable:$true] %s36_s16 }
   0x8   :  { %42 = dma.hbm_to_vmem [thread:$0]  %s35_s12, 8192, %s37_s16, [#allocation6], %s1408_s13, %s1408_s13, %s1409_s14  }
   0x9   :  { %1401 = dma.done.wait [#allocation3], 4096  }
   0xa   :  { %1402 = vsyncadd [#allocation3], 4294963200 }
   0xb   :  { %1403 = dma.done.wait [#allocation6], 8192  }
   0xc   :  { %1404 = vsyncadd [#allocation6], 4294959104  ;;  %v1464_v0 = vld [vmem:[#allocation5 + $0x1e0] sm:$0xff]  ;;  %v1466_v1 = vld [vmem:[#allocation5 + $0x1e8] sm:$0xff]  ;;  %vm1120_vm0 = vcmask 31744   ;;  %s1166_s27 = sshll.u32 %s2334_s8, 4  ;;  %s1167_s27 = int_to_ptr.hbm [resolvable:$true] %s1166_s27 }
   0xd   :  { %v1468_v2 = vld [vmem:[#allocation5 + $0x1f0] sm:$0xff]  ;;  %148 = vmatpush.msra.mxu0 %v1464_v0  ;;  %168 = vmatpush.msra.mxu1 %v1466_v1  ;;  %v1472_v3 = vld [vmem:[#allocation5 + $0x1c0] sm:$0xff]  ;;  %v1474_v4 = vld [vmem:[#allocation5 + $0x1c8] sm:$0xff]  ;;  %s1412_s10 = smov [#allocation7]  }
   0xe   :  { %v1476_v5 = vld [vmem:[#allocation5 + $0x1d0] sm:$0xff]  ;;  %188 = vmatpush.msra.mxu2 %v1468_v2  ;;  %v1479_v6 = vld [vmem:[#allocation5 + $0x1a0] sm:$0xff]  ;;  %v1481_v7 = vld [vmem:[#allocation5 + $0x1a8] sm:$0xff] }
   0xf   :  { %149 = vmatpush.msra.mxu0 %v1472_v3  ;;  %169 = vmatpush.msra.mxu1 %v1474_v4  ;;  %v1485_v8 = vld [vmem:[#allocation5 + $0x1b0] sm:$0xff]  ;;  %v1487_v9 = vld [vmem:[#allocation5 + $0x1f8] sm:$0xff]  ;;  %v1491_v10 = vld [vmem:[#allocation5 + $0x180] sm:$0xff] }
  0x10   :  { %189 = vmatpush.msra.mxu2 %v1476_v5  ;;  %208 = vmatpush.msra.mxu3 %v1487_v9  ;;  %v1493_v11 = vld [vmem:[#allocation5 + $0x188] sm:$0xff]  ;;  %v1495_v12 = vld [vmem:[#allocation5 + $0x1d8] sm:$0xff]  ;;  %v1499_v13 = vld [vmem:[#allocation5 + $0x190] sm:$0xff] }
  0x11   :  { %150 = vmatpush.msra.mxu0 %v1479_v6  ;;  %170 = vmatpush.msra.mxu1 %v1481_v7  ;;  %v1501_v14 = vld [vmem:[#allocation5 + $0x1b8] sm:$0xff]  ;;  %v1505_v15 = vld [vmem:[#allocation5 + $0x160] sm:$0xff]  ;;  %v1507_v16 = vld [vmem:[#allocation5 + $0x168] sm:$0xff] }
  0x12   :  { %190 = vmatpush.msra.mxu2 %v1485_v8  ;;  %209 = vmatpush.msra.mxu3 %v1495_v12  ;;  %v1511_v17 = vld [vmem:[#allocation5 + $0x170] sm:$0xff]  ;;  %v1513_v18 = vld [vmem:[#allocation5 + $0x198] sm:$0xff]  ;;  %v1517_v19 = vld [vmem:[#allocation5 + $0x140] sm:$0xff] }
  0x13   :  { %151 = vmatpush.msra.mxu0 %v1491_v10  ;;  %171 = vmatpush.msra.mxu1 %v1493_v11  ;;  %v1519_v20 = vld [vmem:[#allocation5 + $0x148] sm:$0xff]  ;;  %v1523_v21 = vld [vmem:[#allocation5 + $0x150] sm:$0xff]  ;;  %v1525_v22 = vld [vmem:[#allocation5 + $0x178] sm:$0xff] }
  0x14   :  { %191 = vmatpush.msra.mxu2 %v1499_v13  ;;  %210 = vmatpush.msra.mxu3 %v1501_v14  ;;  %v1529_v23 = vld [vmem:[#allocation5 + $0x120] sm:$0xff]  ;;  %v1531_v24 = vld [vmem:[#allocation5 + $0x128] sm:$0xff]  ;;  %v1535_v25 = vld [vmem:[#allocation5 + $0x130] sm:$0xff] }
  0x15   :  { %152 = vmatpush.msra.mxu0 %v1505_v15  ;;  %172 = vmatpush.msra.mxu1 %v1507_v16  ;;  %v1537_v26 = vld [vmem:[#allocation5 + $0x158] sm:$0xff]  ;;  %v1541_v27 = vld [vmem:[#allocation5 + $0x100] sm:$0xff]  ;;  %v1543_v28 = vld [vmem:[#allocation5 + $0x108] sm:$0xff] }
  0x16   :  { %192 = vmatpush.msra.mxu2 %v1511_v17  ;;  %211 = vmatpush.msra.mxu3 %v1513_v18  ;;  %v1547_v29 = vld [vmem:[#allocation5 + $0x110] sm:$0xff]  ;;  %v1549_v30 = vld [vmem:[#allocation5 + $0x138] sm:$0xff]  ;;  %v1553_v31 = vld [vmem:[#allocation5 + $0xe0] sm:$0xff] }
  0x17   :  { %153 = vmatpush.msra.mxu0 %v1517_v19  ;;  %173 = vmatpush.msra.mxu1 %v1519_v20  ;;  %v1555_v32 = vld [vmem:[#allocation5 + $0xe8] sm:$0xff]  ;;  %v1559_v33 = vld [vmem:[#allocation5 + $0xf0] sm:$0xff]  ;;  %v1561_v34 = vld [vmem:[#allocation5 + $0x118] sm:$0xff] }
  0x18   :  { %193 = vmatpush.msra.mxu2 %v1523_v21  ;;  %212 = vmatpush.msra.mxu3 %v1525_v22  ;;  %v1565_v35 = vld [vmem:[#allocation5 + $0xc0] sm:$0xff]  ;;  %v1567_v36 = vld [vmem:[#allocation5 + $0xc8] sm:$0xff]  ;;  %v1571_v37 = vld [vmem:[#allocation5 + $0xd0] sm:$0xff] }
  0x19   :  { %154 = vmatpush.msra.mxu0 %v1529_v23  ;;  %174 = vmatpush.msra.mxu1 %v1531_v24  ;;  %v1573_v38 = vld [vmem:[#allocation5 + $0xf8] sm:$0xff]  ;;  %v1577_v39 = vld [vmem:[#allocation5 + $0xa0] sm:$0xff]  ;;  %v1579_v40 = vld [vmem:[#allocation5 + $0xa8] sm:$0xff] }
  0x1a   :  { %194 = vmatpush.msra.mxu2 %v1535_v25  ;;  %213 = vmatpush.msra.mxu3 %v1537_v26  ;;  %v1583_v41 = vld [vmem:[#allocation5 + $0xb0] sm:$0xff]  ;;  %v1585_v42 = vld [vmem:[#allocation5 + $0xd8] sm:$0xff]  ;;  %v1589_v43 = vld [vmem:[#allocation5 + $0x80] sm:$0xff] }
  0x1b   :  { %155 = vmatpush.msra.mxu0 %v1541_v27  ;;  %175 = vmatpush.msra.mxu1 %v1543_v28  ;;  %2399 = vst [vmem:[#allocation11_spill] sm:$0xff] %v1589_v43  ;;  %v1591_v44 = vld [vmem:[#allocation5 + $0x88] sm:$0xff]  ;;  %v1595_v45 = vld [vmem:[#allocation5 + $0x90] sm:$0xff]  ;;  %v1597_v46 = vld [vmem:[#allocation5 + $0xb8] sm:$0xff] }
  0x1c   :  { %195 = vmatpush.msra.mxu2 %v1547_v29  ;;  %214 = vmatpush.msra.mxu3 %v1549_v30  ;;  %2400 = vst [vmem:[#allocation12_spill] sm:$0xff] %v1591_v44  ;;  %v1601_v47 = vld [vmem:[#allocation5 + $0x60] sm:$0xff]  ;;  %v1603_v48 = vld [vmem:[#allocation5 + $0x68] sm:$0xff]  ;;  %v1607_v49 = vld [vmem:[#allocation5 + $0x70] sm:$0xff] }
  0x1d   :  { %156 = vmatpush.msra.mxu0 %v1553_v31  ;;  %176 = vmatpush.msra.mxu1 %v1555_v32  ;;  %2401 = vst [vmem:[#allocation13_spill] sm:$0xff] %v1595_v45  ;;  %v1609_v50 = vld [vmem:[#allocation5 + $0x98] sm:$0xff]  ;;  %v1613_v51 = vld [vmem:[#allocation5 + $0x40] sm:$0xff]  ;;  %v1615_v52 = vld [vmem:[#allocation5 + $0x48] sm:$0xff] }
  0x1e   :  { %196 = vmatpush.msra.mxu2 %v1559_v33  ;;  %215 = vmatpush.msra.mxu3 %v1561_v34  ;;  %2402 = vst [vmem:[#allocation14_spill] sm:$0xff] %v1597_v46  ;;  %v1619_v53 = vld [vmem:[#allocation5 + $0x50] sm:$0xff]  ;;  %v1621_v54 = vld [vmem:[#allocation5 + $0x78] sm:$0xff]  ;;  %v1625_v55 = vld [vmem:[#allocation5 + $0x20] sm:$0xff] }
  0x1f   :  { %157 = vmatpush.msra.mxu0 %v1565_v35  ;;  %177 = vmatpush.msra.mxu1 %v1567_v36  ;;  %2403 = vst [vmem:[#allocation15_spill] sm:$0xff] %v1601_v47  ;;  %v1627_v56 = vld [vmem:[#allocation5 + $0x28] sm:$0xff]  ;;  %v1631_v57 = vld [vmem:[#allocation5 + $0x30] sm:$0xff]  ;;  %v1633_v58 = vld [vmem:[#allocation5 + $0x58] sm:$0xff] }
  0x20   :  { %197 = vmatpush.msra.mxu2 %v1571_v37  ;;  %216 = vmatpush.msra.mxu3 %v1573_v38  ;;  %2404 = vst [vmem:[#allocation16_spill] sm:$0xff] %v1603_v48  ;;  %v1637_v59 = vld [vmem:[#allocation5] sm:$0xff]  ;;  %v1639_v60 = vld [vmem:[#allocation5 + $0x8] sm:$0xff]  ;;  %v1643_v61 = vld [vmem:[#allocation5 + $0x10] sm:$0xff] }
  0x21   :  { %158 = vmatpush.msra.mxu0 %v1577_v39  ;;  %178 = vmatpush.msra.mxu1 %v1579_v40  ;;  %2405 = vst [vmem:[#allocation17_spill] sm:$0xff] %v1607_v49  ;;  %v61_v62 = vld [vmem:[%s2328_s2] sm:$0xff]  ;;  %v1652_v63 = vld [vmem:[#allocation5 + $0x38] sm:$0xff] }
  0x22   :  { %198 = vmatpush.msra.mxu2 %v1583_v41  ;;  %217 = vmatpush.msra.mxu3 %v1585_v42  ;;  %2406 = vst [vmem:[#allocation18_spill] sm:$0xff] %v1609_v50 }
  0x23   :  { %159 = vmatpush.msra.mxu0 %v1589_v43  ;;  %179 = vmatpush.msra.mxu1 %v1591_v44  ;;  %2407 = vst [vmem:[#allocation19_spill] sm:$0xff] %v1613_v51 }
  0x24   :  { %199 = vmatpush.msra.mxu2 %v1595_v45  ;;  %218 = vmatpush.msra.mxu3 %v1597_v46  ;;  %2408 = vst [vmem:[#allocation20_spill] sm:$0xff] %v1615_v52 }
  0x25   :  { %160 = vmatpush.msra.mxu0 %v1601_v47  ;;  %180 = vmatpush.msra.mxu1 %v1603_v48  ;;  %2409 = vst [vmem:[#allocation21_spill] sm:$0xff] %v1619_v53 }
  0x26   :  { %2410 = vst [vmem:[#allocation22_spill] sm:$0xff] %v1621_v54  ;;  %200 = vmatpush.msra.mxu2 %v1607_v49  ;;  %219 = vmatpush.msra.mxu3 %v1609_v50 }
  0x27   :  { %2411 = vst [vmem:[#allocation23_spill] sm:$0xff] %v1625_v55  ;;  %161 = vmatpush.msra.mxu0 %v1613_v51  ;;  %181 = vmatpush.msra.mxu1 %v1615_v52 }
  0x28   :  { %2412 = vst [vmem:[#allocation24_spill] sm:$0xff] %v1627_v56  ;;  %201 = vmatpush.msra.mxu2 %v1619_v53  ;;  %220 = vmatpush.msra.mxu3 %v1621_v54 }
  0x29   :  { %2413 = vst [vmem:[#allocation25_spill] sm:$0xff] %v1631_v57  ;;  %162 = vmatpush.msra.mxu0 %v1625_v55  ;;  %182 = vmatpush.msra.mxu1 %v1627_v56  ;;  %v1655_v56 = vld [vmem:[#allocation5 + $0x18] sm:$0xff] }
  0x2a   :  { %2414 = vst [vmem:[#allocation26_spill] sm:$0xff] %v1633_v58  ;;  %202 = vmatpush.msra.mxu2 %v1631_v57  ;;  %221 = vmatpush.msra.mxu3 %v1633_v58 }
  0x2b   :  { %2415 = vst [vmem:[#allocation27_spill] sm:$0xff] %v1637_v59  ;;  %163 = vmatpush.msra.mxu0 %v1637_v59  ;;  %183 = vmatpush.msra.mxu1 %v1639_v60 }
  0x2c   :  { %2416 = vst [vmem:[#allocation28_spill] sm:$0xff] %v1639_v60  ;;  %203 = vmatpush.msra.mxu2 %v1643_v61  ;;  %164 = vmatmul.f32.vlgmr.msra.gmra.mxu0 %v61_v62 }
  0x2d   :  { %2417 = vst [vmem:[#allocation29_spill] sm:$0xff] %v1643_v61  ;;  %184 = vmatmul.f32.vlgmr.msra.gmra.mxu1 %v61_v62  ;;  %204 = vmatmul.f32.vlgmr.msra.gmra.mxu2 %v61_v62 }
  0x2e   :  { %2418 = vst [vmem:[#allocation30_spill] sm:$0xff] %v1652_v63  ;;  %222 = vmatpush.msra.mxu3 %v1652_v63  ;;  %265 = vmatpush.msrb.mxu0 %v1464_v0 }
  0x2f   :  { %2419 = vst [vmem:[#allocation31_spill] sm:$0xff] %v1655_v56  ;;  %285 = vmatpush.msrb.mxu1 %v1466_v1  ;;  %305 = vmatpush.msrb.mxu2 %v1468_v2 }
  0x30   :  { %223 = vmatpush.msra.mxu3 %v1655_v56  ;;  %266 = vmatpush.msrb.mxu0 %v1472_v3 }
  0x31   :  { %224 = vmatmul.f32.vlgmr.msra.gmra.mxu3 %v61_v62  ;;  %286 = vmatpush.msrb.mxu1 %v1474_v4  ;;  %v2420_v62 = vld [vmem:[#allocation24_spill] sm:$0xff] }
  0x32   :  { %325 = vmatpush.msrb.mxu3 %v1487_v9  ;;  %306 = vmatpush.msrb.mxu2 %v1476_v5 }
  0x33   :  { %267 = vmatpush.msrb.mxu0 %v1479_v6  ;;  %287 = vmatpush.msrb.mxu1 %v1481_v7 }
  0x34   :  { %326 = vmatpush.msrb.mxu3 %v1495_v12  ;;  %307 = vmatpush.msrb.mxu2 %v1485_v8 }
  0x35   :  { %268 = vmatpush.msrb.mxu0 %v1491_v10  ;;  %288 = vmatpush.msrb.mxu1 %v1493_v11 }
  0x36   :  { %327 = vmatpush.msrb.mxu3 %v1501_v14  ;;  %308 = vmatpush.msrb.mxu2 %v1499_v13 }
  0x37   :  { %269 = vmatpush.msrb.mxu0 %v1505_v15  ;;  %289 = vmatpush.msrb.mxu1 %v1507_v16 }
  0x38   :  { %328 = vmatpush.msrb.mxu3 %v1513_v18  ;;  %309 = vmatpush.msrb.mxu2 %v1511_v17 }
  0x39   :  { %270 = vmatpush.msrb.mxu0 %v1517_v19  ;;  %290 = vmatpush.msrb.mxu1 %v1519_v20 }
  0x3a   :  { %329 = vmatpush.msrb.mxu3 %v1525_v22  ;;  %310 = vmatpush.msrb.mxu2 %v1523_v21 }
  0x3b   :  { %271 = vmatpush.msrb.mxu0 %v1529_v23  ;;  %291 = vmatpush.msrb.mxu1 %v1531_v24 }
  0x3c   :  { %330 = vmatpush.msrb.mxu3 %v1537_v26  ;;  %311 = vmatpush.msrb.mxu2 %v1535_v25 }
  0x3d   :  { %272 = vmatpush.msrb.mxu0 %v1541_v27  ;;  %292 = vmatpush.msrb.mxu1 %v1543_v28 }
  0x3e   :  { %331 = vmatpush.msrb.mxu3 %v1549_v30  ;;  %312 = vmatpush.msrb.mxu2 %v1547_v29 }
  0x3f   :  { %273 = vmatpush.msrb.mxu0 %v1553_v31  ;;  %293 = vmatpush.msrb.mxu1 %v1555_v32 }
  0x40   :  { %332 = vmatpush.msrb.mxu3 %v1561_v34  ;;  %313 = vmatpush.msrb.mxu2 %v1559_v33 }
  0x41   :  { %274 = vmatpush.msrb.mxu0 %v1565_v35  ;;  %294 = vmatpush.msrb.mxu1 %v1567_v36 }
  0x42   :  { %333 = vmatpush.msrb.mxu3 %v1573_v38  ;;  %314 = vmatpush.msrb.mxu2 %v1571_v37 }
  0x43   :  { %275 = vmatpush.msrb.mxu0 %v1577_v39  ;;  %295 = vmatpush.msrb.mxu1 %v1579_v40 }
  0x44   :  { %334 = vmatpush.msrb.mxu3 %v1585_v42  ;;  %315 = vmatpush.msrb.mxu2 %v1583_v41 }
  0x45   :  { %276 = vmatpush.msrb.mxu0 %v1589_v43  ;;  %296 = vmatpush.msrb.mxu1 %v1591_v44 }
  0x46   :  { %335 = vmatpush.msrb.mxu3 %v1597_v46  ;;  %316 = vmatpush.msrb.mxu2 %v1595_v45 }
  0x47   :  { %277 = vmatpush.msrb.mxu0 %v1601_v47  ;;  %297 = vmatpush.msrb.mxu1 %v1603_v48 }
  0x48   :  { %336 = vmatpush.msrb.mxu3 %v1609_v50  ;;  %317 = vmatpush.msrb.mxu2 %v1607_v49 }
  0x49   :  { %278 = vmatpush.msrb.mxu0 %v1613_v51  ;;  %298 = vmatpush.msrb.mxu1 %v1615_v52 }
  0x4a   :  { %337 = vmatpush.msrb.mxu3 %v1621_v54  ;;  %318 = vmatpush.msrb.mxu2 %v1619_v53 }
  0x4b   :  { %279 = vmatpush.msrb.mxu0 %v1625_v55  ;;  %299 = vmatpush.msrb.mxu1 %v2420_v62 }
  0x4c   :  { %338 = vmatpush.msrb.mxu3 %v1633_v58  ;;  %319 = vmatpush.msrb.mxu2 %v1631_v57 }
  0x4d   :  { %280 = vmatpush.msrb.mxu0 %v1637_v59  ;;  %300 = vmatpush.msrb.mxu1 %v1639_v60 }
  0x4e   :  { %339 = vmatpush.msrb.mxu3 %v1652_v63  ;;  %320 = vmatpush.msrb.mxu2 %v1643_v61 }
  0x4f   :  { %382 = vmatpush.msra.mxu0 %v1464_v0  ;;  %402 = vmatpush.msra.mxu1 %v1466_v1 }
  0x50   :  { %340 = vmatpush.msrb.mxu3 %v1655_v56  ;;  %422 = vmatpush.msra.mxu2 %v1468_v2 }
  0x51   :  { %383 = vmatpush.msra.mxu0 %v1472_v3  ;;  %403 = vmatpush.msra.mxu1 %v1474_v4 }
  0x52   :  { %442 = vmatpush.msra.mxu3 %v1487_v9  ;;  %423 = vmatpush.msra.mxu2 %v1476_v5 }
  0x53   :  { %384 = vmatpush.msra.mxu0 %v1479_v6  ;;  %404 = vmatpush.msra.mxu1 %v1481_v7 }
  0x54   :  { %443 = vmatpush.msra.mxu3 %v1495_v12  ;;  %424 = vmatpush.msra.mxu2 %v1485_v8 }
  0x55   :  { %385 = vmatpush.msra.mxu0 %v1491_v10  ;;  %405 = vmatpush.msra.mxu1 %v1493_v11 }
  0x56   :  { %444 = vmatpush.msra.mxu3 %v1501_v14  ;;  %425 = vmatpush.msra.mxu2 %v1499_v13 }
  0x57   :  { %386 = vmatpush.msra.mxu0 %v1505_v15  ;;  %406 = vmatpush.msra.mxu1 %v1507_v16 }
  0x58   :  { %445 = vmatpush.msra.mxu3 %v1513_v18  ;;  %426 = vmatpush.msra.mxu2 %v1511_v17 }
  0x59   :  { %387 = vmatpush.msra.mxu0 %v1517_v19  ;;  %407 = vmatpush.msra.mxu1 %v1519_v20 }
  0x5a   :  { %446 = vmatpush.msra.mxu3 %v1525_v22  ;;  %427 = vmatpush.msra.mxu2 %v1523_v21 }
  0x5b   :  { %388 = vmatpush.msra.mxu0 %v1529_v23  ;;  %408 = vmatpush.msra.mxu1 %v1531_v24 }
  0x5c   :  { %447 = vmatpush.msra.mxu3 %v1537_v26  ;;  %428 = vmatpush.msra.mxu2 %v1535_v25 }
  0x5d   :  { %389 = vmatpush.msra.mxu0 %v1541_v27  ;;  %409 = vmatpush.msra.mxu1 %v1543_v28 }
  0x5e   :  { %448 = vmatpush.msra.mxu3 %v1549_v30  ;;  %429 = vmatpush.msra.mxu2 %v1547_v29 }
  0x5f   :  { %390 = vmatpush.msra.mxu0 %v1553_v31  ;;  %410 = vmatpush.msra.mxu1 %v1555_v32 }
  0x60   :  { %449 = vmatpush.msra.mxu3 %v1561_v34  ;;  %430 = vmatpush.msra.mxu2 %v1559_v33 }
  0x61   :  { %391 = vmatpush.msra.mxu0 %v1565_v35  ;;  %411 = vmatpush.msra.mxu1 %v1567_v36 }
  0x62   :  { %450 = vmatpush.msra.mxu3 %v1573_v38  ;;  %431 = vmatpush.msra.mxu2 %v1571_v37 }
  0x63   :  { %392 = vmatpush.msra.mxu0 %v1577_v39  ;;  %412 = vmatpush.msra.mxu1 %v1579_v40 }
  0x64   :  { %451 = vmatpush.msra.mxu3 %v1585_v42  ;;  %432 = vmatpush.msra.mxu2 %v1583_v41 }
  0x65   :  { %393 = vmatpush.msra.mxu0 %v1589_v43  ;;  %413 = vmatpush.msra.mxu1 %v1591_v44 }
  0x66   :  { %452 = vmatpush.msra.mxu3 %v1597_v46  ;;  %433 = vmatpush.msra.mxu2 %v1595_v45 }
  0x67   :  { %394 = vmatpush.msra.mxu0 %v1601_v47  ;;  %414 = vmatpush.msra.mxu1 %v1603_v48 }
  0x68   :  { %453 = vmatpush.msra.mxu3 %v1609_v50  ;;  %434 = vmatpush.msra.mxu2 %v1607_v49 }
  0x69   :  { %395 = vmatpush.msra.mxu0 %v1613_v51  ;;  %415 = vmatpush.msra.mxu1 %v1615_v52  ;;  %v144_v52 = vld [vmem:[#allocation2] sm:$0xff] }
  0x6a   :  { %454 = vmatpush.msra.mxu3 %v1621_v54  ;;  %435 = vmatpush.msra.mxu2 %v1619_v53  ;;  %v145_v53 = vld [vmem:[#allocation2 + $0x8] sm:$0xff] }
  0x6b   :  { %396 = vmatpush.msra.mxu0 %v1625_v55  ;;  %416 = vmatpush.msra.mxu1 %v2420_v62 }
  0x6c   :  { %455 = vmatpush.msra.mxu3 %v1633_v58  ;;  %436 = vmatpush.msra.mxu2 %v1631_v57  ;;  %v146_v57 = vld [vmem:[#allocation2 + $0x10] sm:$0xff] }
  0x6d   :  { %397 = vmatpush.msra.mxu0 %v1637_v59  ;;  %417 = vmatpush.msra.mxu1 %v1639_v60  ;;  %v147_v59 = vld [vmem:[#allocation2 + $0x18] sm:$0xff] }
  0x6e   :  { %456 = vmatpush.msra.mxu3 %v1652_v63  ;;  %437 = vmatpush.msra.mxu2 %v1643_v61 }
  0x70   :  { %457 = vmatpush.msra.mxu3 %v1655_v56 }
  0xa9   :  { %v165_v51 = vpop.f32.mrf.mxu0 }
  0xaa   :  { %v228_v58 = vadd.f32 %v165_v51, %v144_v52  ;;  %v185_v54 = vpop.f32.mrf.mxu1  ;;  %v62_v51 = vld [vmem:[%s2329_s3] sm:$0xff] }
  0xab   :  { %v229_v55 = vadd.f32 %v185_v54, %v145_v53 }
  0xac   :  { %v232_v49 = vmul.f32 0.5, %v228_v58 }
  0xad   :  { %v233_v62 = vmul.f32 0.5, %v229_v55 }
  0xae   :  { %1191 = vtanh.f32 %v232_v49 }
  0xaf   :  { %1193 = vtanh.f32 %v233_v62  ;;  %v2427_v62 = vld [vmem:[#allocation22_spill] sm:$0xff] }
  0xb0   :  { %v205_v63 = vpop.f32.mrf.mxu2 }
  0xb1   :  { %v230_v48 = vadd.f32 %v205_v63, %v146_v57  ;;  %v2426_v63 = vld [vmem:[#allocation17_spill] sm:$0xff] }
  0xb3   :  { %1195 = vtanh.f32 %v230_v48 }
  0xb4   :  { %v1192_v60 = vpop.eup %1191  ;;  %v225_v47 = vpop.f32.mrf.mxu3 }
  0xb5   :  { %v1194_v61 = vpop.eup %1193  ;;  %v244_v50 = vmul.f32 0.5, %v1192_v60  ;;  %v231_v56 = vadd.f32 %v225_v47, %v147_v59 }
  0xb6   :  { %v245_v45 = vmul.f32 0.5, %v1194_v61  ;;  %v2425_v61 = vld [vmem:[#allocation16_spill] sm:$0xff] }
  0xb7   :  { %v248_v44 = vadd.f32 0.5, %v244_v50  ;;  %v235_v52 = vmul.f32 0.5, %v231_v56  ;;  %v2423_v50 = vld [vmem:[#allocation18_spill] sm:$0xff]  ;;  %v2424_v56 = vld [vmem:[#allocation15_spill] sm:$0xff] }
  0xb8   :  { %v249_v53 = vadd.f32 0.5, %v245_v45  ;;  %v2422_v45 = vld [vmem:[#allocation13_spill] sm:$0xff] }
  0xb9   :  { %v1196_v49 = vpop.eup %1195  ;;  %1197 = vtanh.f32 %v235_v52  ;;  %v2429_v52 = vld [vmem:[#allocation20_spill] sm:$0xff] }
  0xba   :  { %v256_v54 = vmul.f32 %v249_v53, %v62_v51  ;;  %v257_v55 = vmul.f32 %v1196_v49, %v248_v44  ;;  %v2421_v44 = vld [vmem:[#allocation12_spill] sm:$0xff]  ;;  %v2428_v51 = vld [vmem:[#allocation19_spill] sm:$0xff]  ;;  %v2430_v53 = vld [vmem:[#allocation21_spill] sm:$0xff] }
  0xbb   :  { %v2431_v49 = vld [vmem:[#allocation26_spill] sm:$0xff] }
  0xbc   :  { %v1790_v57 = vadd.f32 %v257_v55, %v256_v54  ;;  %v2432_v54 = vld [vmem:[#allocation23_spill] sm:$0xff]  ;;  %v2433_v55 = vld [vmem:[#allocation24_spill] sm:$0xff] }
  0xbe   :  { %1199 = vtanh.f32 %v1790_v57 }
  0xbf   :  { %v1198_v48 = vpop.eup %1197 }
  0xc0   :  { %v247_v58 = vmul.f32 0.5, %v1198_v48  ;;  %v2434_v48 = vld [vmem:[#allocation25_spill] sm:$0xff] }
  0xc2   :  { %v251_v60 = vadd.f32 0.5, %v247_v58  ;;  %v2435_v58 = vld [vmem:[#allocation30_spill] sm:$0xff] }
  0xc4   :  { %v1200_v47 = vpop.eup %1199 }
  0xc5   :  { %v260_v59 = vmul.f32 %v1200_v47, %v251_v60  ;;  %v2436_v60 = vld [vmem:[#allocation27_spill] sm:$0xff]  ;;  %v2437_v47 = vld [vmem:[#allocation28_spill] sm:$0xff] }
  0xc7   :  { %281 = vmatmul.f32.vlgmr.msrb.gmra.mxu0 %v260_v59  ;;  %301 = vmatmul.f32.vlgmr.msrb.gmra.mxu1 %v260_v59 }
  0xc8   :  { %321 = vmatmul.f32.vlgmr.msrb.gmra.mxu2 %v260_v59  ;;  %341 = vmatmul.f32.vlgmr.msrb.gmra.mxu3 %v260_v59  ;;  %v2438_v59 = vld [vmem:[#allocation29_spill] sm:$0xff] }
  0xc9   :  { %499 = vmatpush.msrb.mxu0 %v1464_v0  ;;  %519 = vmatpush.msrb.mxu1 %v1466_v1 }
  0xca   :  { %539 = vmatpush.msrb.mxu2 %v1468_v2  ;;  %559 = vmatpush.msrb.mxu3 %v1487_v9 }
  0xcb   :  { %500 = vmatpush.msrb.mxu0 %v1472_v3  ;;  %520 = vmatpush.msrb.mxu1 %v1474_v4 }
  0xcc   :  { %540 = vmatpush.msrb.mxu2 %v1476_v5  ;;  %560 = vmatpush.msrb.mxu3 %v1495_v12 }
  0xcd   :  { %501 = vmatpush.msrb.mxu0 %v1479_v6  ;;  %521 = vmatpush.msrb.mxu1 %v1481_v7 }
  0xce   :  { %541 = vmatpush.msrb.mxu2 %v1485_v8  ;;  %561 = vmatpush.msrb.mxu3 %v1501_v14 }
  0xcf   :  { %502 = vmatpush.msrb.mxu0 %v1491_v10  ;;  %522 = vmatpush.msrb.mxu1 %v1493_v11 }
  0xd0   :  { %542 = vmatpush.msrb.mxu2 %v1499_v13  ;;  %562 = vmatpush.msrb.mxu3 %v1513_v18 }
  0xd1   :  { %503 = vmatpush.msrb.mxu0 %v1505_v15  ;;  %523 = vmatpush.msrb.mxu1 %v1507_v16 }
  0xd2   :  { %543 = vmatpush.msrb.mxu2 %v1511_v17  ;;  %563 = vmatpush.msrb.mxu3 %v1525_v22 }
  0xd3   :  { %504 = vmatpush.msrb.mxu0 %v1517_v19  ;;  %524 = vmatpush.msrb.mxu1 %v1519_v20 }
  0xd4   :  { %544 = vmatpush.msrb.mxu2 %v1523_v21  ;;  %564 = vmatpush.msrb.mxu3 %v1537_v26 }
  0xd5   :  { %505 = vmatpush.msrb.mxu0 %v1529_v23  ;;  %525 = vmatpush.msrb.mxu1 %v1531_v24 }
  0xd6   :  { %545 = vmatpush.msrb.mxu2 %v1535_v25  ;;  %565 = vmatpush.msrb.mxu3 %v1549_v30 }
  0xd7   :  { %506 = vmatpush.msrb.mxu0 %v1541_v27  ;;  %526 = vmatpush.msrb.mxu1 %v1543_v28 }
  0xd8   :  { %546 = vmatpush.msrb.mxu2 %v1547_v29  ;;  %566 = vmatpush.msrb.mxu3 %v1561_v34 }
  0xd9   :  { %507 = vmatpush.msrb.mxu0 %v1553_v31  ;;  %527 = vmatpush.msrb.mxu1 %v1555_v32 }
  0xda   :  { %547 = vmatpush.msrb.mxu2 %v1559_v33  ;;  %567 = vmatpush.msrb.mxu3 %v1573_v38 }
  0xdb   :  { %508 = vmatpush.msrb.mxu0 %v1565_v35  ;;  %528 = vmatpush.msrb.mxu1 %v1567_v36 }
  0xdc   :  { %548 = vmatpush.msrb.mxu2 %v1571_v37  ;;  %568 = vmatpush.msrb.mxu3 %v1585_v42 }
  0xdd   :  { %509 = vmatpush.msrb.mxu0 %v1577_v39  ;;  %529 = vmatpush.msrb.mxu1 %v1579_v40 }
  0xde   :  { %549 = vmatpush.msrb.mxu2 %v1583_v41  ;;  %569 = vmatpush.msrb.mxu3 %v1597_v46 }
  0xdf   :  { %510 = vmatpush.msrb.mxu0 %v1589_v43  ;;  %530 = vmatpush.msrb.mxu1 %v2421_v44 }
  0xe0   :  { %550 = vmatpush.msrb.mxu2 %v2422_v45  ;;  %570 = vmatpush.msrb.mxu3 %v2423_v50 }
  0xe1   :  { %511 = vmatpush.msrb.mxu0 %v2424_v56  ;;  %531 = vmatpush.msrb.mxu1 %v2425_v61  ;;  %v264_v56 = vld [vmem:[#allocation2 + $0x38] sm:$0xff] }
  0xe2   :  { %551 = vmatpush.msrb.mxu2 %v2426_v63  ;;  %571 = vmatpush.msrb.mxu3 %v2427_v62 }
  0xe3   :  { %512 = vmatpush.msrb.mxu0 %v2428_v51  ;;  %532 = vmatpush.msrb.mxu1 %v2429_v52  ;;  %v2439_v51 = vld [vmem:[#allocation31_spill] sm:$0xff] }
  0xe4   :  { %552 = vmatpush.msrb.mxu2 %v2430_v53  ;;  %572 = vmatpush.msrb.mxu3 %v2431_v49  ;;  %v261_v52 = vld [vmem:[#allocation2 + $0x20] sm:$0xff]  ;;  %v262_v53 = vld [vmem:[#allocation2 + $0x28] sm:$0xff] }
  0xe5   :  { %513 = vmatpush.msrb.mxu0 %v2432_v54  ;;  %533 = vmatpush.msrb.mxu1 %v2433_v55 }
  0xe6   :  { %553 = vmatpush.msrb.mxu2 %v2434_v48  ;;  %573 = vmatpush.msrb.mxu3 %v2435_v58  ;;  %v263_v48 = vld [vmem:[#allocation2 + $0x30] sm:$0xff] }
  0xe7   :  { %514 = vmatpush.msrb.mxu0 %v2436_v60  ;;  %534 = vmatpush.msrb.mxu1 %v2437_v47 }
  0xe8   :  { %554 = vmatpush.msrb.mxu2 %v2438_v59  ;;  %574 = vmatpush.msrb.mxu3 %v2439_v51 }
 0x144   :  { %v282_v62 = vpop.f32.mrf.mxu0  ;;  %v302_v49 = vpop.f32.mrf.mxu1 }
 0x145   :  { %v345_v63 = vadd.f32 %v282_v62, %v261_v52  ;;  %v346_v54 = vadd.f32 %v302_v49, %v262_v53 }
 0x147   :  { %v349_v61 = vmul.f32 0.5, %v345_v63  ;;  %v350_v55 = vmul.f32 0.5, %v346_v54 }
 0x149   :  { %1201 = vtanh.f32 %v349_v61 }
 0x14a   :  { %1203 = vtanh.f32 %v350_v55 }
 0x14b   :  { %v322_v58 = vpop.f32.mrf.mxu2  ;;  %v342_v60 = vpop.f32.mrf.mxu3 }
 0x14c   :  { %v347_v50 = vadd.f32 %v322_v58, %v263_v48  ;;  %v348_v47 = vadd.f32 %v342_v60, %v264_v56  ;;  %v2446_v48 = vld [vmem:[#allocation16_spill] sm:$0xff]  ;;  %v2447_v58 = vld [vmem:[#allocation17_spill] sm:$0xff]  ;;  %v2448_v60 = vld [vmem:[#allocation22_spill] sm:$0xff] }
 0x14e   :  { %1205 = vtanh.f32 %v347_v50  ;;  %v352_v59 = vmul.f32 0.5, %v348_v47  ;;  %v2449_v47 = vld [vmem:[#allocation19_spill] sm:$0xff] }
 0x14f   :  { %v1202_v45 = vpop.eup %1201 }
 0x150   :  { %v1204_v51 = vpop.eup %1203  ;;  %v361_v44 = vmul.f32 0.5, %v1202_v45  ;;  %1207 = vtanh.f32 %v352_v59  ;;  %v2444_v45 = vld [vmem:[#allocation18_spill] sm:$0xff]  ;;  %v2450_v59 = vld [vmem:[#allocation20_spill] sm:$0xff] }
 0x151   :  { %v362_v43 = vmul.f32 0.5, %v1204_v51  ;;  %v2445_v51 = vld [vmem:[#allocation15_spill] sm:$0xff] }
 0x152   :  { %v365_v46 = vadd.f32 0.5, %v361_v44  ;;  %v2443_v44 = vld [vmem:[#allocation13_spill] sm:$0xff] }
 0x153   :  { %v366_v62 = vadd.f32 0.5, %v362_v43  ;;  %v2440_v43 = vld [vmem:[#allocation14_spill] sm:$0xff] }
 0x154   :  { %v1206_v52 = vpop.eup %1205 }
 0x155   :  { %v373_v63 = vmul.f32 %v366_v62, %v1790_v57  ;;  %v374_v61 = vmul.f32 %v1206_v52, %v365_v46  ;;  %v2441_v46 = vld [vmem:[#allocation11_spill] sm:$0xff]  ;;  %v2442_v57 = vld [vmem:[#allocation12_spill] sm:$0xff]  ;;  %v2451_v62 = vld [vmem:[#allocation21_spill] sm:$0xff] }
 0x156   :  { %v1208_v53 = vpop.eup %1207  ;;  %v2452_v52 = vld [vmem:[#allocation26_spill] sm:$0xff] }
 0x157   :  { %v1858_v49 = vadd.f32 %v374_v61, %v373_v63  ;;  %v364_v54 = vmul.f32 0.5, %v1208_v53  ;;  %v2453_v63 = vld [vmem:[#allocation23_spill] sm:$0xff]  ;;  %v2454_v61 = vld [vmem:[#allocation24_spill] sm:$0xff]  ;;  %v2455_v53 = vld [vmem:[#allocation25_spill] sm:$0xff] }
 0x159   :  { %1209 = vtanh.f32 %v1858_v49  ;;  %v368_v56 = vadd.f32 0.5, %v364_v54  ;;  %v2456_v54 = vld [vmem:[#allocation30_spill] sm:$0xff] }
 0x15f   :  { %v1210_v50 = vpop.eup %1209 }
 0x160   :  { %v377_v55 = vmul.f32 %v1210_v50, %v368_v56  ;;  %v2457_v56 = vld [vmem:[#allocation27_spill] sm:$0xff]  ;;  %v2458_v50 = vld [vmem:[#allocation28_spill] sm:$0xff] }
 0x162   :  { %398 = vmatmul.f32.vlgmr.msra.gmra.mxu0 %v377_v55  ;;  %418 = vmatmul.f32.vlgmr.msra.gmra.mxu1 %v377_v55 }
 0x163   :  { %438 = vmatmul.f32.vlgmr.msra.gmra.mxu2 %v377_v55  ;;  %458 = vmatmul.f32.vlgmr.msra.gmra.mxu3 %v377_v55  ;;  %v2459_v55 = vld [vmem:[#allocation29_spill] sm:$0xff] }
 0x164   :  { %616 = vmatpush.msra.mxu0 %v1464_v0  ;;  %636 = vmatpush.msra.mxu1 %v1466_v1 }
 0x165   :  { %656 = vmatpush.msra.mxu2 %v1468_v2  ;;  %676 = vmatpush.msra.mxu3 %v1487_v9 }
 0x166   :  { %617 = vmatpush.msra.mxu0 %v1472_v3  ;;  %637 = vmatpush.msra.mxu1 %v1474_v4 }
 0x167   :  { %657 = vmatpush.msra.mxu2 %v1476_v5  ;;  %677 = vmatpush.msra.mxu3 %v1495_v12 }
 0x168   :  { %618 = vmatpush.msra.mxu0 %v1479_v6  ;;  %638 = vmatpush.msra.mxu1 %v1481_v7 }
 0x169   :  { %658 = vmatpush.msra.mxu2 %v1485_v8  ;;  %678 = vmatpush.msra.mxu3 %v1501_v14 }
 0x16a   :  { %619 = vmatpush.msra.mxu0 %v1491_v10  ;;  %639 = vmatpush.msra.mxu1 %v1493_v11 }
 0x16b   :  { %659 = vmatpush.msra.mxu2 %v1499_v13  ;;  %679 = vmatpush.msra.mxu3 %v1513_v18 }
 0x16c   :  { %620 = vmatpush.msra.mxu0 %v1505_v15  ;;  %640 = vmatpush.msra.mxu1 %v1507_v16 }
 0x16d   :  { %660 = vmatpush.msra.mxu2 %v1511_v17  ;;  %680 = vmatpush.msra.mxu3 %v1525_v22 }
 0x16e   :  { %621 = vmatpush.msra.mxu0 %v1517_v19  ;;  %641 = vmatpush.msra.mxu1 %v1519_v20 }
 0x16f   :  { %661 = vmatpush.msra.mxu2 %v1523_v21  ;;  %681 = vmatpush.msra.mxu3 %v1537_v26 }
 0x170   :  { %622 = vmatpush.msra.mxu0 %v1529_v23  ;;  %642 = vmatpush.msra.mxu1 %v1531_v24 }
 0x171   :  { %662 = vmatpush.msra.mxu2 %v1535_v25  ;;  %682 = vmatpush.msra.mxu3 %v1549_v30 }
 0x172   :  { %623 = vmatpush.msra.mxu0 %v1541_v27  ;;  %643 = vmatpush.msra.mxu1 %v1543_v28 }
 0x173   :  { %663 = vmatpush.msra.mxu2 %v1547_v29  ;;  %683 = vmatpush.msra.mxu3 %v1561_v34 }
 0x174   :  { %624 = vmatpush.msra.mxu0 %v1553_v31  ;;  %644 = vmatpush.msra.mxu1 %v1555_v32 }
 0x175   :  { %664 = vmatpush.msra.mxu2 %v1559_v33  ;;  %684 = vmatpush.msra.mxu3 %v1573_v38 }
 0x176   :  { %625 = vmatpush.msra.mxu0 %v1565_v35  ;;  %645 = vmatpush.msra.mxu1 %v1567_v36 }
 0x177   :  { %665 = vmatpush.msra.mxu2 %v1571_v37  ;;  %685 = vmatpush.msra.mxu3 %v1585_v42 }
 0x178   :  { %626 = vmatpush.msra.mxu0 %v1577_v39  ;;  %646 = vmatpush.msra.mxu1 %v1579_v40 }
 0x179   :  { %666 = vmatpush.msra.mxu2 %v1583_v41  ;;  %686 = vmatpush.msra.mxu3 %v2440_v43 }
 0x17a   :  { %627 = vmatpush.msra.mxu0 %v2441_v46  ;;  %647 = vmatpush.msra.mxu1 %v2442_v57 }
 0x17b   :  { %667 = vmatpush.msra.mxu2 %v2443_v44  ;;  %687 = vmatpush.msra.mxu3 %v2444_v45 }
 0x17c   :  { %628 = vmatpush.msra.mxu0 %v2445_v51  ;;  %648 = vmatpush.msra.mxu1 %v2446_v48  ;;  %v381_v51 = vld [vmem:[#allocation2 + $0x58] sm:$0xff] }
 0x17d   :  { %668 = vmatpush.msra.mxu2 %v2447_v58  ;;  %688 = vmatpush.msra.mxu3 %v2448_v60 }
 0x17e   :  { %629 = vmatpush.msra.mxu0 %v2449_v47  ;;  %649 = vmatpush.msra.mxu1 %v2450_v59  ;;  %v2460_v47 = vld [vmem:[#allocation31_spill] sm:$0xff] }
 0x17f   :  { %669 = vmatpush.msra.mxu2 %v2451_v62  ;;  %689 = vmatpush.msra.mxu3 %v2452_v52  ;;  %v378_v59 = vld [vmem:[#allocation2 + $0x40] sm:$0xff]  ;;  %v379_v62 = vld [vmem:[#allocation2 + $0x48] sm:$0xff] }
 0x180   :  { %630 = vmatpush.msra.mxu0 %v2453_v63  ;;  %650 = vmatpush.msra.mxu1 %v2454_v61 }
 0x181   :  { %670 = vmatpush.msra.mxu2 %v2455_v53  ;;  %690 = vmatpush.msra.mxu3 %v2456_v54  ;;  %v380_v53 = vld [vmem:[#allocation2 + $0x50] sm:$0xff] }
 0x182   :  { %631 = vmatpush.msra.mxu0 %v2457_v56  ;;  %651 = vmatpush.msra.mxu1 %v2458_v50 }
 0x183   :  { %671 = vmatpush.msra.mxu2 %v2459_v55  ;;  %691 = vmatpush.msra.mxu3 %v2460_v47 }
 0x1df   :  { %v399_v60 = vpop.f32.mrf.mxu0  ;;  %v419_v52 = vpop.f32.mrf.mxu1 }
 0x1e0   :  { %v462_v58 = vadd.f32 %v399_v60, %v378_v59  ;;  %v463_v63 = vadd.f32 %v419_v52, %v379_v62 }
 0x1e2   :  { %v466_v48 = vmul.f32 0.5, %v462_v58  ;;  %v467_v61 = vmul.f32 0.5, %v463_v63 }
 0x1e4   :  { %1211 = vtanh.f32 %v466_v48 }
 0x1e5   :  { %1213 = vtanh.f32 %v467_v61 }
 0x1e6   :  { %v439_v54 = vpop.f32.mrf.mxu2  ;;  %v459_v56 = vpop.f32.mrf.mxu3 }
 0x1e7   :  { %v464_v45 = vadd.f32 %v439_v54, %v380_v53  ;;  %v465_v50 = vadd.f32 %v459_v56, %v381_v51  ;;  %v1997_v56 = vld [vmem:[#allocation5 + $0x1e0] sm:$0xff] }
 0x1e9   :  { %1215 = vtanh.f32 %v464_v45  ;;  %v469_v55 = vmul.f32 0.5, %v465_v50  ;;  %v2000_v50 = vld [vmem:[#allocation5 + $0x1e8] sm:$0xff] }
 0x1ea   :  { %v1212_v44 = vpop.eup %1211 }
 0x1eb   :  { %v1214_v47 = vpop.eup %1213  ;;  %v478_v57 = vmul.f32 0.5, %v1212_v44  ;;  %1217 = vtanh.f32 %v469_v55  ;;  %v2003_v55 = vld [vmem:[#allocation5 + $0x1f0] sm:$0xff] }
 0x1ec   :  { %v479_v46 = vmul.f32 0.5, %v1214_v47 }
 0x1ed   :  { %v482_v43 = vadd.f32 0.5, %v478_v57 }
 0x1ee   :  { %v483_v60 = vadd.f32 0.5, %v479_v46 }
 0x1ef   :  { %v1216_v59 = vpop.eup %1215 }
 0x1f0   :  { %v490_v58 = vmul.f32 %v483_v60, %v1858_v49  ;;  %v491_v48 = vmul.f32 %v1216_v59, %v482_v43  ;;  %v2006_v60 = vld [vmem:[#allocation5 + $0x1f8] sm:$0xff]  ;;  %v2009_v59 = vld [vmem:[#allocation5 + $0x1c0] sm:$0xff] }
 0x1f1   :  { %v1218_v62 = vpop.eup %1217 }
 0x1f2   :  { %v1926_v52 = vadd.f32 %v491_v48, %v490_v58  ;;  %v481_v63 = vmul.f32 0.5, %v1218_v62  ;;  %v2012_v58 = vld [vmem:[#allocation5 + $0x1c8] sm:$0xff]  ;;  %v2015_v48 = vld [vmem:[#allocation5 + $0x1d0] sm:$0xff]  ;;  %v2018_v62 = vld [vmem:[#allocation5 + $0x1d8] sm:$0xff] }
 0x1f4   :  { %1219 = vtanh.f32 %v1926_v52  ;;  %v485_v51 = vadd.f32 0.5, %v481_v63  ;;  %v2024_v63 = vld [vmem:[#allocation5 + $0x1a8] sm:$0xff] }
 0x1fa   :  { %v1220_v45 = vpop.eup %1219 }
 0x1fb   :  { %v494_v61 = vmul.f32 %v1220_v45, %v485_v51  ;;  %v2027_v51 = vld [vmem:[#allocation5 + $0x1b0] sm:$0xff]  ;;  %v2030_v45 = vld [vmem:[#allocation5 + $0x1b8] sm:$0xff] }
 0x1fd   :  { %515 = vmatmul.f32.vlgmr.msrb.gmra.mxu0 %v494_v61  ;;  %535 = vmatmul.f32.vlgmr.msrb.gmra.mxu1 %v494_v61 }
 0x1fe   :  { %555 = vmatmul.f32.vlgmr.msrb.gmra.mxu2 %v494_v61  ;;  %575 = vmatmul.f32.vlgmr.msrb.gmra.mxu3 %v494_v61  ;;  %v2033_v61 = vld [vmem:[#allocation5 + $0x180] sm:$0xff] }
 0x1ff   :  { %733 = vmatpush.msrb.mxu0 %v1464_v0  ;;  %753 = vmatpush.msrb.mxu1 %v1466_v1  ;;  %v2461_v0 = vld [vmem:[#allocation14_spill] sm:$0xff]  ;;  %v2462_v1 = vld [vmem:[#allocation11_spill] sm:$0xff] }
 0x200   :  { %773 = vmatpush.msrb.mxu2 %v1468_v2  ;;  %793 = vmatpush.msrb.mxu3 %v1487_v9  ;;  %v2463_v2 = vld [vmem:[#allocation12_spill] sm:$0xff]  ;;  %v2470_v9 = vld [vmem:[#allocation19_spill] sm:$0xff] }
 0x201   :  { %734 = vmatpush.msrb.mxu0 %v1472_v3  ;;  %754 = vmatpush.msrb.mxu1 %v1474_v4  ;;  %v2464_v3 = vld [vmem:[#allocation13_spill] sm:$0xff]  ;;  %v2465_v4 = vld [vmem:[#allocation18_spill] sm:$0xff] }
 0x202   :  { %774 = vmatpush.msrb.mxu2 %v1476_v5  ;;  %794 = vmatpush.msrb.mxu3 %v1495_v12  ;;  %v2466_v5 = vld [vmem:[#allocation15_spill] sm:$0xff]  ;;  %v2473_v12 = vld [vmem:[#allocation26_spill] sm:$0xff] }
 0x203   :  { %735 = vmatpush.msrb.mxu0 %v1479_v6  ;;  %755 = vmatpush.msrb.mxu1 %v1481_v7  ;;  %v2467_v6 = vld [vmem:[#allocation16_spill] sm:$0xff]  ;;  %v2468_v7 = vld [vmem:[#allocation17_spill] sm:$0xff] }
 0x204   :  { %775 = vmatpush.msrb.mxu2 %v1485_v8  ;;  %795 = vmatpush.msrb.mxu3 %v1501_v14  ;;  %v2469_v8 = vld [vmem:[#allocation22_spill] sm:$0xff]  ;;  %v2475_v14 = vld [vmem:[#allocation24_spill] sm:$0xff] }
 0x205   :  { %736 = vmatpush.msrb.mxu0 %v1491_v10  ;;  %756 = vmatpush.msrb.mxu1 %v1493_v11  ;;  %v2471_v10 = vld [vmem:[#allocation20_spill] sm:$0xff]  ;;  %v2472_v11 = vld [vmem:[#allocation21_spill] sm:$0xff] }
 0x206   :  { %776 = vmatpush.msrb.mxu2 %v1499_v13  ;;  %796 = vmatpush.msrb.mxu3 %v1513_v18  ;;  %v2474_v13 = vld [vmem:[#allocation23_spill] sm:$0xff]  ;;  %v2479_v18 = vld [vmem:[#allocation28_spill] sm:$0xff] }
 0x207   :  { %737 = vmatpush.msrb.mxu0 %v1505_v15  ;;  %757 = vmatpush.msrb.mxu1 %v1507_v16  ;;  %v2476_v15 = vld [vmem:[#allocation25_spill] sm:$0xff]  ;;  %v2477_v16 = vld [vmem:[#allocation30_spill] sm:$0xff] }
 0x208   :  { %777 = vmatpush.msrb.mxu2 %v1511_v17  ;;  %797 = vmatpush.msrb.mxu3 %v1525_v22  ;;  %v2478_v17 = vld [vmem:[#allocation27_spill] sm:$0xff]  ;;  %v496_v22 = vld [vmem:[#allocation2 + $0x68] sm:$0xff] }
 0x209   :  { %738 = vmatpush.msrb.mxu0 %v1517_v19  ;;  %758 = vmatpush.msrb.mxu1 %v1519_v20  ;;  %v2480_v19 = vld [vmem:[#allocation29_spill] sm:$0xff]  ;;  %v2481_v20 = vld [vmem:[#allocation31_spill] sm:$0xff] }
 0x20a   :  { %778 = vmatpush.msrb.mxu2 %v1523_v21  ;;  %798 = vmatpush.msrb.mxu3 %v1537_v26  ;;  %v495_v21 = vld [vmem:[#allocation2 + $0x60] sm:$0xff] }
 0x20b   :  { %739 = vmatpush.msrb.mxu0 %v1529_v23  ;;  %759 = vmatpush.msrb.mxu1 %v1531_v24 }
 0x20c   :  { %779 = vmatpush.msrb.mxu2 %v1535_v25  ;;  %799 = vmatpush.msrb.mxu3 %v1549_v30  ;;  %v498_v30 = vld [vmem:[#allocation2 + $0x78] sm:$0xff] }
 0x20d   :  { %740 = vmatpush.msrb.mxu0 %v1541_v27  ;;  %760 = vmatpush.msrb.mxu1 %v1543_v28 }
 0x20e   :  { %780 = vmatpush.msrb.mxu2 %v1547_v29  ;;  %800 = vmatpush.msrb.mxu3 %v1561_v34  ;;  %v497_v29 = vld [vmem:[#allocation2 + $0x70] sm:$0xff] }
 0x20f   :  { %741 = vmatpush.msrb.mxu0 %v1553_v31  ;;  %761 = vmatpush.msrb.mxu1 %v1555_v32 }
 0x210   :  { %781 = vmatpush.msrb.mxu2 %v1559_v33  ;;  %801 = vmatpush.msrb.mxu3 %v1573_v38 }
 0x211   :  { %742 = vmatpush.msrb.mxu0 %v1565_v35  ;;  %762 = vmatpush.msrb.mxu1 %v1567_v36 }
 0x212   :  { %782 = vmatpush.msrb.mxu2 %v1571_v37  ;;  %802 = vmatpush.msrb.mxu3 %v1585_v42 }
 0x213   :  { %743 = vmatpush.msrb.mxu0 %v1577_v39  ;;  %763 = vmatpush.msrb.mxu1 %v1579_v40 }
 0x214   :  { %783 = vmatpush.msrb.mxu2 %v1583_v41  ;;  %803 = vmatpush.msrb.mxu3 %v2461_v0  ;;  %v2036_v0 = vld [vmem:[#allocation5 + $0x188] sm:$0xff] }
 0x215   :  { %744 = vmatpush.msrb.mxu0 %v2462_v1  ;;  %764 = vmatpush.msrb.mxu1 %v2463_v2  ;;  %v2039_v1 = vld [vmem:[#allocation5 + $0x190] sm:$0xff]  ;;  %v2042_v2 = vld [vmem:[#allocation5 + $0x198] sm:$0xff] }
 0x216   :  { %784 = vmatpush.msrb.mxu2 %v2464_v3  ;;  %804 = vmatpush.msrb.mxu3 %v2465_v4  ;;  %v2045_v3 = vld [vmem:[#allocation5 + $0x160] sm:$0xff]  ;;  %v2048_v4 = vld [vmem:[#allocation5 + $0x168] sm:$0xff] }
 0x217   :  { %745 = vmatpush.msrb.mxu0 %v2466_v5  ;;  %765 = vmatpush.msrb.mxu1 %v2467_v6  ;;  %v2051_v5 = vld [vmem:[#allocation5 + $0x170] sm:$0xff]  ;;  %v2054_v6 = vld [vmem:[#allocation5 + $0x178] sm:$0xff] }
 0x218   :  { %785 = vmatpush.msrb.mxu2 %v2468_v7  ;;  %805 = vmatpush.msrb.mxu3 %v2469_v8  ;;  %v2057_v7 = vld [vmem:[#allocation5 + $0x140] sm:$0xff]  ;;  %v2060_v8 = vld [vmem:[#allocation5 + $0x148] sm:$0xff] }
 0x219   :  { %746 = vmatpush.msrb.mxu0 %v2470_v9  ;;  %766 = vmatpush.msrb.mxu1 %v2471_v10  ;;  %v2063_v9 = vld [vmem:[#allocation5 + $0x150] sm:$0xff]  ;;  %v2066_v10 = vld [vmem:[#allocation5 + $0x158] sm:$0xff] }
 0x21a   :  { %786 = vmatpush.msrb.mxu2 %v2472_v11  ;;  %806 = vmatpush.msrb.mxu3 %v2473_v12  ;;  %v2069_v11 = vld [vmem:[#allocation5 + $0x120] sm:$0xff]  ;;  %v2072_v12 = vld [vmem:[#allocation5 + $0x128] sm:$0xff] }
 0x21b   :  { %747 = vmatpush.msrb.mxu0 %v2474_v13  ;;  %767 = vmatpush.msrb.mxu1 %v2475_v14  ;;  %v2075_v13 = vld [vmem:[#allocation5 + $0x130] sm:$0xff]  ;;  %v2078_v14 = vld [vmem:[#allocation5 + $0x138] sm:$0xff] }
 0x21c   :  { %787 = vmatpush.msrb.mxu2 %v2476_v15  ;;  %807 = vmatpush.msrb.mxu3 %v2477_v16  ;;  %v2081_v15 = vld [vmem:[#allocation5 + $0x100] sm:$0xff]  ;;  %v2084_v16 = vld [vmem:[#allocation5 + $0x108] sm:$0xff] }
 0x21d   :  { %748 = vmatpush.msrb.mxu0 %v2478_v17  ;;  %768 = vmatpush.msrb.mxu1 %v2479_v18  ;;  %v2087_v17 = vld [vmem:[#allocation5 + $0x110] sm:$0xff]  ;;  %v2090_v18 = vld [vmem:[#allocation5 + $0x118] sm:$0xff] }
 0x21e   :  { %788 = vmatpush.msrb.mxu2 %v2480_v19  ;;  %808 = vmatpush.msrb.mxu3 %v2481_v20  ;;  %v2093_v19 = vld [vmem:[#allocation5 + $0xe0] sm:$0xff]  ;;  %v2096_v20 = vld [vmem:[#allocation5 + $0xe8] sm:$0xff] }
 0x27a   :  { %v516_v23 = vpop.f32.mrf.mxu0  ;;  %v536_v24 = vpop.f32.mrf.mxu1 }
 0x27b   :  { %v579_v25 = vadd.f32 %v516_v23, %v495_v21  ;;  %v580_v26 = vadd.f32 %v536_v24, %v496_v22  ;;  %v2099_v21 = vld [vmem:[#allocation5 + $0xf0] sm:$0xff]  ;;  %v2102_v22 = vld [vmem:[#allocation5 + $0xf8] sm:$0xff]  ;;  %v2105_v23 = vld [vmem:[#allocation5 + $0xc0] sm:$0xff] }
 0x27c   :  { %v2108_v24 = vld [vmem:[#allocation5 + $0xc8] sm:$0xff] }
 0x27d   :  { %v583_v27 = vmul.f32 0.5, %v579_v25  ;;  %v584_v28 = vmul.f32 0.5, %v580_v26  ;;  %v2111_v25 = vld [vmem:[#allocation5 + $0xd0] sm:$0xff]  ;;  %v2114_v26 = vld [vmem:[#allocation5 + $0xd8] sm:$0xff] }
 0x27f   :  { %1221 = vtanh.f32 %v583_v27  ;;  %v2117_v27 = vld [vmem:[#allocation5 + $0xa0] sm:$0xff] }
 0x280   :  { %1223 = vtanh.f32 %v584_v28  ;;  %v2120_v28 = vld [vmem:[#allocation5 + $0xa8] sm:$0xff] }
 0x281   :  { %v556_v31 = vpop.f32.mrf.mxu2  ;;  %v576_v32 = vpop.f32.mrf.mxu3 }
 0x282   :  { %v581_v33 = vadd.f32 %v556_v31, %v497_v29  ;;  %v582_v34 = vadd.f32 %v576_v32, %v498_v30  ;;  %v2123_v29 = vld [vmem:[#allocation5 + $0xb0] sm:$0xff]  ;;  %v2126_v30 = vld [vmem:[#allocation5 + $0xb8] sm:$0xff]  ;;  %v2129_v31 = vld [vmem:[#allocation5 + $0x80] sm:$0xff] }
 0x283   :  { %2482 = vst [vmem:[#allocation14_spill] sm:$0xff] %v2126_v30  ;;  %v2132_v32 = vld [vmem:[#allocation5 + $0x88] sm:$0xff] }
 0x284   :  { %1225 = vtanh.f32 %v581_v33  ;;  %v586_v35 = vmul.f32 0.5, %v582_v34  ;;  %2483 = vst [vmem:[#allocation11_spill] sm:$0xff] %v2129_v31  ;;  %v2135_v33 = vld [vmem:[#allocation5 + $0x90] sm:$0xff]  ;;  %v2138_v34 = vld [vmem:[#allocation5 + $0x98] sm:$0xff] }
 0x285   :  { %v1222_v36 = vpop.eup %1221  ;;  %2484 = vst [vmem:[#allocation12_spill] sm:$0xff] %v2132_v32 }
 0x286   :  { %v1224_v37 = vpop.eup %1223  ;;  %v595_v38 = vmul.f32 0.5, %v1222_v36  ;;  %1227 = vtanh.f32 %v586_v35  ;;  %2485 = vst [vmem:[#allocation13_spill] sm:$0xff] %v2135_v33  ;;  %v2141_v35 = vld [vmem:[#allocation5 + $0x60] sm:$0xff]  ;;  %v2144_v36 = vld [vmem:[#allocation5 + $0x68] sm:$0xff] }
 0x287   :  { %v596_v39 = vmul.f32 0.5, %v1224_v37  ;;  %2486 = vst [vmem:[#allocation18_spill] sm:$0xff] %v2138_v34  ;;  %v2147_v37 = vld [vmem:[#allocation5 + $0x70] sm:$0xff] }
 0x288   :  { %v599_v40 = vadd.f32 0.5, %v595_v38  ;;  %2487 = vst [vmem:[#allocation15_spill] sm:$0xff] %v2141_v35  ;;  %v2150_v38 = vld [vmem:[#allocation5 + $0x78] sm:$0xff] }
 0x289   :  { %v600_v41 = vadd.f32 0.5, %v596_v39  ;;  %2488 = vst [vmem:[#allocation16_spill] sm:$0xff] %v2144_v36  ;;  %v2153_v39 = vld [vmem:[#allocation5 + $0x40] sm:$0xff] }
 0x28a   :  { %v1226_v42 = vpop.eup %1225  ;;  %2489 = vst [vmem:[#allocation17_spill] sm:$0xff] %v2147_v37 }
 0x28b   :  { %v607_v49 = vmul.f32 %v600_v41, %v1926_v52  ;;  %v608_v43 = vmul.f32 %v1226_v42, %v599_v40  ;;  %v2021_v52 = vld [vmem:[#allocation5 + $0x1a0] sm:$0xff]  ;;  %2490 = vst [vmem:[#allocation22_spill] sm:$0xff] %v2150_v38  ;;  %v2156_v40 = vld [vmem:[#allocation5 + $0x48] sm:$0xff]  ;;  %v2159_v41 = vld [vmem:[#allocation5 + $0x50] sm:$0xff] }
 0x28c   :  { %v1228_v46 = vpop.eup %1227  ;;  %2491 = vst [vmem:[#allocation19_spill] sm:$0xff] %v2153_v39  ;;  %v2162_v42 = vld [vmem:[#allocation5 + $0x58] sm:$0xff] }
 0x28d   :  { %v1994_v57 = vadd.f32 %v608_v43, %v607_v49  ;;  %v598_v44 = vmul.f32 0.5, %v1228_v46  ;;  %2492 = vst [vmem:[#allocation20_spill] sm:$0xff] %v2156_v40  ;;  %v2165_v49 = vld [vmem:[#allocation5 + $0x20] sm:$0xff]  ;;  %v2168_v43 = vld [vmem:[#allocation5 + $0x28] sm:$0xff]  ;;  %v2171_v46 = vld [vmem:[#allocation5 + $0x30] sm:$0xff] }
 0x28e   :  { %2493 = vst [vmem:[#allocation21_spill] sm:$0xff] %v2159_v41 }
 0x28f   :  { %1229 = vtanh.f32 %v1994_v57  ;;  %v602_v47 = vadd.f32 0.5, %v598_v44  ;;  %2494 = vst [vmem:[#allocation26_spill] sm:$0xff] %v2162_v42  ;;  %v2174_v44 = vld [vmem:[#allocation5 + $0x38] sm:$0xff] }
 0x290   :  { %2495 = vst [vmem:[#allocation23_spill] sm:$0xff] %v2165_v49 }
 0x291   :  { %2496 = vst [vmem:[#allocation24_spill] sm:$0xff] %v2168_v43 }
 0x292   :  { %2497 = vst [vmem:[#allocation25_spill] sm:$0xff] %v2171_v46 }
 0x293   :  { %2498 = vst [vmem:[#allocation30_spill] sm:$0xff] %v2174_v44 }
 0x295   :  { %v1230_v53 = vpop.eup %1229 }
 0x296   :  { %v611_v54 = vmul.f32 %v1230_v53, %v602_v47  ;;  %v2177_v47 = vld [vmem:[#allocation5] sm:$0xff]  ;;  %v2180_v53 = vld [vmem:[#allocation5 + $0x8] sm:$0xff] }
 0x297   :  { %2499 = vst [vmem:[#allocation27_spill] sm:$0xff] %v2177_v47 }
 0x298   :  { %632 = vmatmul.f32.vlgmr.msra.gmra.mxu0 %v611_v54  ;;  %652 = vmatmul.f32.vlgmr.msra.gmra.mxu1 %v611_v54  ;;  %2500 = vst [vmem:[#allocation28_spill] sm:$0xff] %v2180_v53 }
 0x299   :  { %672 = vmatmul.f32.vlgmr.msra.gmra.mxu2 %v611_v54  ;;  %692 = vmatmul.f32.vlgmr.msra.gmra.mxu3 %v611_v54  ;;  %v2183_v54 = vld [vmem:[#allocation5 + $0x10] sm:$0xff] }
 0x29a   :  { %850 = vmatpush.msra.mxu0 %v1997_v56  ;;  %870 = vmatpush.msra.mxu1 %v2000_v50  ;;  %2501 = vst [vmem:[#allocation29_spill] sm:$0xff] %v2183_v54 }
 0x29b   :  { %890 = vmatpush.msra.mxu2 %v2003_v55  ;;  %910 = vmatpush.msra.mxu3 %v2006_v60 }
 0x29c   :  { %851 = vmatpush.msra.mxu0 %v2009_v59  ;;  %871 = vmatpush.msra.mxu1 %v2012_v58 }
 0x29d   :  { %891 = vmatpush.msra.mxu2 %v2015_v48  ;;  %911 = vmatpush.msra.mxu3 %v2018_v62 }
 0x29e   :  { %852 = vmatpush.msra.mxu0 %v2021_v52  ;;  %872 = vmatpush.msra.mxu1 %v2024_v63 }
 0x29f   :  { %892 = vmatpush.msra.mxu2 %v2027_v51  ;;  %912 = vmatpush.msra.mxu3 %v2030_v45 }
 0x2a0   :  { %853 = vmatpush.msra.mxu0 %v2033_v61  ;;  %873 = vmatpush.msra.mxu1 %v2036_v0 }
 0x2a1   :  { %893 = vmatpush.msra.mxu2 %v2039_v1  ;;  %913 = vmatpush.msra.mxu3 %v2042_v2 }
 0x2a2   :  { %854 = vmatpush.msra.mxu0 %v2045_v3  ;;  %874 = vmatpush.msra.mxu1 %v2048_v4 }
 0x2a3   :  { %894 = vmatpush.msra.mxu2 %v2051_v5  ;;  %914 = vmatpush.msra.mxu3 %v2054_v6 }
 0x2a4   :  { %855 = vmatpush.msra.mxu0 %v2057_v7  ;;  %875 = vmatpush.msra.mxu1 %v2060_v8 }
 0x2a5   :  { %895 = vmatpush.msra.mxu2 %v2063_v9  ;;  %915 = vmatpush.msra.mxu3 %v2066_v10 }
 0x2a6   :  { %856 = vmatpush.msra.mxu0 %v2069_v11  ;;  %876 = vmatpush.msra.mxu1 %v2072_v12 }
 0x2a7   :  { %896 = vmatpush.msra.mxu2 %v2075_v13  ;;  %916 = vmatpush.msra.mxu3 %v2078_v14 }
 0x2a8   :  { %857 = vmatpush.msra.mxu0 %v2081_v15  ;;  %877 = vmatpush.msra.mxu1 %v2084_v16 }
 0x2a9   :  { %897 = vmatpush.msra.mxu2 %v2087_v17  ;;  %917 = vmatpush.msra.mxu3 %v2090_v18 }
 0x2aa   :  { %858 = vmatpush.msra.mxu0 %v2093_v19  ;;  %878 = vmatpush.msra.mxu1 %v2096_v20 }
 0x2ab   :  { %898 = vmatpush.msra.mxu2 %v2099_v21  ;;  %918 = vmatpush.msra.mxu3 %v2102_v22 }
 0x2ac   :  { %859 = vmatpush.msra.mxu0 %v2105_v23  ;;  %879 = vmatpush.msra.mxu1 %v2108_v24 }
 0x2ad   :  { %899 = vmatpush.msra.mxu2 %v2111_v25  ;;  %919 = vmatpush.msra.mxu3 %v2114_v26 }
 0x2ae   :  { %860 = vmatpush.msra.mxu0 %v2117_v27  ;;  %880 = vmatpush.msra.mxu1 %v2120_v28 }
 0x2af   :  { %900 = vmatpush.msra.mxu2 %v2123_v29  ;;  %920 = vmatpush.msra.mxu3 %v2126_v30 }
 0x2b0   :  { %861 = vmatpush.msra.mxu0 %v2129_v31  ;;  %881 = vmatpush.msra.mxu1 %v2132_v32 }
 0x2b1   :  { %901 = vmatpush.msra.mxu2 %v2135_v33  ;;  %921 = vmatpush.msra.mxu3 %v2138_v34 }
 0x2b2   :  { %862 = vmatpush.msra.mxu0 %v2141_v35  ;;  %882 = vmatpush.msra.mxu1 %v2144_v36 }
 0x2b3   :  { %902 = vmatpush.msra.mxu2 %v2147_v37  ;;  %922 = vmatpush.msra.mxu3 %v2150_v38  ;;  %v614_v38 = vld [vmem:[#allocation2 + $0x90] sm:$0xff]  ;;  %v615_v37 = vld [vmem:[#allocation2 + $0x98] sm:$0xff] }
 0x2b4   :  { %863 = vmatpush.msra.mxu0 %v2153_v39  ;;  %883 = vmatpush.msra.mxu1 %v2156_v40 }
 0x2b5   :  { %903 = vmatpush.msra.mxu2 %v2159_v41  ;;  %923 = vmatpush.msra.mxu3 %v2162_v42 }
 0x2b6   :  { %864 = vmatpush.msra.mxu0 %v2165_v49  ;;  %884 = vmatpush.msra.mxu1 %v2168_v43  ;;  %v2186_v43 = vld [vmem:[#allocation5 + $0x18] sm:$0xff]  ;;  %v613_v49 = vld [vmem:[#allocation2 + $0x88] sm:$0xff] }
 0x2b7   :  { %904 = vmatpush.msra.mxu2 %v2171_v46  ;;  %924 = vmatpush.msra.mxu3 %v2174_v44  ;;  %2502 = vst [vmem:[#allocation31_spill] sm:$0xff] %v2186_v43  ;;  %v612_v46 = vld [vmem:[#allocation2 + $0x80] sm:$0xff] }
 0x2b8   :  { %865 = vmatpush.msra.mxu0 %v2177_v47  ;;  %885 = vmatpush.msra.mxu1 %v2180_v53 }
 0x2b9   :  { %905 = vmatpush.msra.mxu2 %v2183_v54  ;;  %925 = vmatpush.msra.mxu3 %v2186_v43 }
 0x315   :  { %v633_v42 = vpop.f32.mrf.mxu0  ;;  %v653_v44 = vpop.f32.mrf.mxu1 }
 0x316   :  { %v696_v41 = vadd.f32 %v633_v42, %v612_v46  ;;  %v697_v40 = vadd.f32 %v653_v44, %v613_v49 }
 0x318   :  { %v700_v39 = vmul.f32 0.5, %v696_v41  ;;  %v701_v47 = vmul.f32 0.5, %v697_v40 }
 0x31a   :  { %1231 = vtanh.f32 %v700_v39 }
 0x31b   :  { %1233 = vtanh.f32 %v701_v47  ;;  %v846_v47 = vld [vmem:[#allocation2 + $0xc0] sm:$0xff] }
 0x31c   :  { %v673_v53 = vpop.f32.mrf.mxu2  ;;  %v693_v36 = vpop.f32.mrf.mxu3 }
 0x31d   :  { %v698_v35 = vadd.f32 %v673_v53, %v614_v38  ;;  %v699_v54 = vadd.f32 %v693_v36, %v615_v37  ;;  %v847_v53 = vld [vmem:[#allocation2 + $0xc8] sm:$0xff] }
 0x31f   :  { %1235 = vtanh.f32 %v698_v35  ;;  %v703_v34 = vmul.f32 0.5, %v699_v54  ;;  %v1095_v54 = vld [vmem:[%s2330_s4 + $0x78] sm:$0xff] }
 0x320   :  { %v1232_v33 = vpop.eup %1231 }
 0x321   :  { %v1234_v43 = vpop.eup %1233  ;;  %v712_v32 = vmul.f32 0.5, %v1232_v33  ;;  %1237 = vtanh.f32 %v703_v34 }
 0x322   :  { %v713_v31 = vmul.f32 0.5, %v1234_v43 }
 0x323   :  { %v716_v30 = vadd.f32 0.5, %v712_v32 }
 0x324   :  { %v717_v42 = vadd.f32 0.5, %v713_v31 }
 0x325   :  { %v1236_v49 = vpop.eup %1235 }
 0x326   :  { %v724_v40 = vmul.f32 %v717_v42, %v1994_v57  ;;  %v725_v39 = vmul.f32 %v1236_v49, %v716_v30  ;;  %v2503_v57 = vld [vmem:[#allocation14_spill] sm:$0xff] }
 0x327   :  { %v1238_v41 = vpop.eup %1237 }
 0x328   :  { %v2190_v46 = vadd.f32 %v725_v39, %v724_v40  ;;  %v715_v38 = vmul.f32 0.5, %v1238_v41 }
 0x32a   :  { %1239 = vtanh.f32 %v2190_v46  ;;  %v719_v36 = vadd.f32 0.5, %v715_v38  ;;  %v848_v38 = vld [vmem:[#allocation2 + $0xd0] sm:$0xff] }
 0x330   :  { %v1240_v35 = vpop.eup %1239 }
 0x331   :  { %v728_v37 = vmul.f32 %v1240_v35, %v719_v36  ;;  %v849_v36 = vld [vmem:[#allocation2 + $0xd8] sm:$0xff] }
 0x333   :  { %749 = vmatmul.f32.vlgmr.msrb.gmra.mxu0 %v728_v37  ;;  %769 = vmatmul.f32.vlgmr.msrb.gmra.mxu1 %v728_v37 }
 0x334   :  { %789 = vmatmul.f32.vlgmr.msrb.gmra.mxu2 %v728_v37  ;;  %809 = vmatmul.f32.vlgmr.msrb.gmra.mxu3 %v728_v37 }
 0x335   :  { %967 = vmatpush.msrb.mxu0 %v1997_v56  ;;  %987 = vmatpush.msrb.mxu1 %v2000_v50  ;;  %v2504_v56 = vld [vmem:[#allocation11_spill] sm:$0xff]  ;;  %v2505_v50 = vld [vmem:[#allocation12_spill] sm:$0xff] }
 0x336   :  { %1007 = vmatpush.msrb.mxu2 %v2003_v55  ;;  %1027 = vmatpush.msrb.mxu3 %v2006_v60  ;;  %v2506_v55 = vld [vmem:[#allocation13_spill] sm:$0xff]  ;;  %v2507_v60 = vld [vmem:[#allocation18_spill] sm:$0xff] }
 0x337   :  { %968 = vmatpush.msrb.mxu0 %v2009_v59  ;;  %988 = vmatpush.msrb.mxu1 %v2012_v58  ;;  %v2508_v59 = vld [vmem:[#allocation15_spill] sm:$0xff]  ;;  %v2509_v58 = vld [vmem:[#allocation16_spill] sm:$0xff] }
 0x338   :  { %1008 = vmatpush.msrb.mxu2 %v2015_v48  ;;  %1028 = vmatpush.msrb.mxu3 %v2018_v62  ;;  %v2510_v48 = vld [vmem:[#allocation17_spill] sm:$0xff]  ;;  %v2511_v62 = vld [vmem:[#allocation22_spill] sm:$0xff] }
 0x339   :  { %969 = vmatpush.msrb.mxu0 %v2021_v52  ;;  %989 = vmatpush.msrb.mxu1 %v2024_v63  ;;  %v2512_v52 = vld [vmem:[#allocation19_spill] sm:$0xff]  ;;  %v2513_v63 = vld [vmem:[#allocation20_spill] sm:$0xff] }
 0x33a   :  { %1009 = vmatpush.msrb.mxu2 %v2027_v51  ;;  %1029 = vmatpush.msrb.mxu3 %v2030_v45  ;;  %v2514_v51 = vld [vmem:[#allocation21_spill] sm:$0xff]  ;;  %v2515_v45 = vld [vmem:[#allocation26_spill] sm:$0xff] }
 0x33b   :  { %970 = vmatpush.msrb.mxu0 %v2033_v61  ;;  %990 = vmatpush.msrb.mxu1 %v2036_v0  ;;  %v2516_v61 = vld [vmem:[#allocation23_spill] sm:$0xff]  ;;  %v2517_v0 = vld [vmem:[#allocation24_spill] sm:$0xff] }
 0x33c   :  { %1010 = vmatpush.msrb.mxu2 %v2039_v1  ;;  %1030 = vmatpush.msrb.mxu3 %v2042_v2  ;;  %v2518_v1 = vld [vmem:[#allocation25_spill] sm:$0xff]  ;;  %v2519_v2 = vld [vmem:[#allocation30_spill] sm:$0xff] }
 0x33d   :  { %971 = vmatpush.msrb.mxu0 %v2045_v3  ;;  %991 = vmatpush.msrb.mxu1 %v2048_v4  ;;  %v2520_v3 = vld [vmem:[#allocation27_spill] sm:$0xff]  ;;  %v2521_v4 = vld [vmem:[#allocation28_spill] sm:$0xff] }
 0x33e   :  { %1011 = vmatpush.msrb.mxu2 %v2051_v5  ;;  %1031 = vmatpush.msrb.mxu3 %v2054_v6  ;;  %v2522_v5 = vld [vmem:[#allocation29_spill] sm:$0xff]  ;;  %v2523_v6 = vld [vmem:[#allocation31_spill] sm:$0xff] }
 0x33f   :  { %972 = vmatpush.msrb.mxu0 %v2057_v7  ;;  %992 = vmatpush.msrb.mxu1 %v2060_v8  ;;  %v729_v7 = vld [vmem:[#allocation2 + $0xa0] sm:$0xff]  ;;  %v730_v8 = vld [vmem:[#allocation2 + $0xa8] sm:$0xff] }
 0x340   :  { %1012 = vmatpush.msrb.mxu2 %v2063_v9  ;;  %1032 = vmatpush.msrb.mxu3 %v2066_v10 }
 0x341   :  { %973 = vmatpush.msrb.mxu0 %v2069_v11  ;;  %993 = vmatpush.msrb.mxu1 %v2072_v12 }
 0x342   :  { %1013 = vmatpush.msrb.mxu2 %v2075_v13  ;;  %1033 = vmatpush.msrb.mxu3 %v2078_v14 }
 0x343   :  { %974 = vmatpush.msrb.mxu0 %v2081_v15  ;;  %994 = vmatpush.msrb.mxu1 %v2084_v16  ;;  %v731_v15 = vld [vmem:[#allocation2 + $0xb0] sm:$0xff]  ;;  %v732_v16 = vld [vmem:[#allocation2 + $0xb8] sm:$0xff] }
 0x344   :  { %1014 = vmatpush.msrb.mxu2 %v2087_v17  ;;  %1034 = vmatpush.msrb.mxu3 %v2090_v18 }
 0x345   :  { %975 = vmatpush.msrb.mxu0 %v2093_v19  ;;  %995 = vmatpush.msrb.mxu1 %v2096_v20 }
 0x346   :  { %1015 = vmatpush.msrb.mxu2 %v2099_v21  ;;  %1035 = vmatpush.msrb.mxu3 %v2102_v22 }
 0x347   :  { %976 = vmatpush.msrb.mxu0 %v2105_v23  ;;  %996 = vmatpush.msrb.mxu1 %v2108_v24 }
 0x348   :  { %1016 = vmatpush.msrb.mxu2 %v2111_v25  ;;  %1036 = vmatpush.msrb.mxu3 %v2114_v26 }
 0x349   :  { %977 = vmatpush.msrb.mxu0 %v2117_v27  ;;  %997 = vmatpush.msrb.mxu1 %v2120_v28 }
 0x34a   :  { %1017 = vmatpush.msrb.mxu2 %v2123_v29  ;;  %1037 = vmatpush.msrb.mxu3 %v2503_v57 }
 0x34b   :  { %978 = vmatpush.msrb.mxu0 %v2504_v56  ;;  %998 = vmatpush.msrb.mxu1 %v2505_v50 }
 0x34c   :  { %1018 = vmatpush.msrb.mxu2 %v2506_v55  ;;  %1038 = vmatpush.msrb.mxu3 %v2507_v60 }
 0x34d   :  { %979 = vmatpush.msrb.mxu0 %v2508_v59  ;;  %999 = vmatpush.msrb.mxu1 %v2509_v58 }
 0x34e   :  { %1019 = vmatpush.msrb.mxu2 %v2510_v48  ;;  %1039 = vmatpush.msrb.mxu3 %v2511_v62 }
 0x34f   :  { %980 = vmatpush.msrb.mxu0 %v2512_v52  ;;  %1000 = vmatpush.msrb.mxu1 %v2513_v63 }
 0x350   :  { %1020 = vmatpush.msrb.mxu2 %v2514_v51  ;;  %1040 = vmatpush.msrb.mxu3 %v2515_v45 }
 0x351   :  { %981 = vmatpush.msrb.mxu0 %v2516_v61  ;;  %1001 = vmatpush.msrb.mxu1 %v2517_v0 }
 0x352   :  { %1021 = vmatpush.msrb.mxu2 %v2518_v1  ;;  %1041 = vmatpush.msrb.mxu3 %v2519_v2 }
 0x353   :  { %982 = vmatpush.msrb.mxu0 %v2520_v3  ;;  %1002 = vmatpush.msrb.mxu1 %v2521_v4  ;;  %v1094_v4 = vld [vmem:[%s2330_s4 + $0x70] sm:$0xff] }
 0x354   :  { %1022 = vmatpush.msrb.mxu2 %v2522_v5  ;;  %1042 = vmatpush.msrb.mxu3 %v2523_v6  ;;  %v1093_v5 = vld [vmem:[%s2330_s4 + $0x68] sm:$0xff]  ;;  %v1092_v6 = vld [vmem:[%s2330_s4 + $0x60] sm:$0xff] }
 0x3b0   :  { %v750_v9 = vpop.f32.mrf.mxu0  ;;  %v770_v10 = vpop.f32.mrf.mxu1 }
 0x3b1   :  { %v813_v11 = vadd.f32 %v750_v9, %v729_v7  ;;  %v814_v12 = vadd.f32 %v770_v10, %v730_v8  ;;  %v1091_v7 = vld [vmem:[%s2330_s4 + $0x58] sm:$0xff]  ;;  %v1090_v8 = vld [vmem:[%s2330_s4 + $0x50] sm:$0xff]  ;;  %v1089_v9 = vld [vmem:[%s2330_s4 + $0x48] sm:$0xff] }
 0x3b2   :  { %v1088_v10 = vld [vmem:[%s2330_s4 + $0x40] sm:$0xff] }
 0x3b3   :  { %v817_v13 = vmul.f32 0.5, %v813_v11  ;;  %v818_v14 = vmul.f32 0.5, %v814_v12  ;;  %v1087_v11 = vld [vmem:[%s2330_s4 + $0x38] sm:$0xff]  ;;  %v1086_v12 = vld [vmem:[%s2330_s4 + $0x30] sm:$0xff] }
 0x3b5   :  { %1241 = vtanh.f32 %v817_v13  ;;  %v1085_v13 = vld [vmem:[%s2330_s4 + $0x28] sm:$0xff] }
 0x3b6   :  { %1243 = vtanh.f32 %v818_v14  ;;  %v1084_v14 = vld [vmem:[%s2330_s4 + $0x20] sm:$0xff] }
 0x3b7   :  { %v790_v17 = vpop.f32.mrf.mxu2  ;;  %v810_v18 = vpop.f32.mrf.mxu3 }
 0x3b8   :  { %v815_v19 = vadd.f32 %v790_v17, %v731_v15  ;;  %v816_v20 = vadd.f32 %v810_v18, %v732_v16  ;;  %v1083_v15 = vld [vmem:[%s2330_s4 + $0x18] sm:$0xff]  ;;  %v1082_v16 = vld [vmem:[%s2330_s4 + $0x10] sm:$0xff]  ;;  %v1081_v17 = vld [vmem:[%s2330_s4 + $0x8] sm:$0xff] }
 0x3b9   :  { %v1080_v18 = vld [vmem:[%s2330_s4] sm:$0xff] }
 0x3ba   :  { %1245 = vtanh.f32 %v815_v19  ;;  %v820_v21 = vmul.f32 0.5, %v816_v20  ;;  %v963_v19 = vld [vmem:[#allocation2 + $0xe0] sm:$0xff]  ;;  %v964_v20 = vld [vmem:[#allocation2 + $0xe8] sm:$0xff] }
 0x3bb   :  { %v1242_v22 = vpop.eup %1241 }
 0x3bc   :  { %v1244_v23 = vpop.eup %1243  ;;  %v829_v24 = vmul.f32 0.5, %v1242_v22  ;;  %1247 = vtanh.f32 %v820_v21 }
 0x3bd   :  { %v830_v25 = vmul.f32 0.5, %v1244_v23 }
 0x3be   :  { %v833_v26 = vadd.f32 0.5, %v829_v24 }
 0x3bf   :  { %v834_v27 = vadd.f32 0.5, %v830_v25 }
 0x3c0   :  { %v1246_v28 = vpop.eup %1245 }
 0x3c1   :  { %v841_v29 = vmul.f32 %v834_v27, %v2190_v46  ;;  %v842_v30 = vmul.f32 %v1246_v28, %v833_v26  ;;  %v965_v27 = vld [vmem:[#allocation2 + $0xf0] sm:$0xff]  ;;  %v966_v28 = vld [vmem:[#allocation2 + $0xf8] sm:$0xff] }
 0x3c2   :  { %v1248_v31 = vpop.eup %1247 }
 0x3c3   :  { %v843_v32 = vadd.f32 %v842_v30, %v841_v29  ;;  %v832_v33 = vmul.f32 0.5, %v1248_v31 }
 0x3c5   :  { %1249 = vtanh.f32 %v843_v32  ;;  %v836_v34 = vadd.f32 0.5, %v832_v33 }
 0x3cb   :  { %v1250_v43 = vpop.eup %1249 }
 0x3cc   :  { %v845_v44 = vmul.f32 %v1250_v43, %v836_v34 }
 0x3ce   :  { %866 = vmatmul.f32.vlgmr.msra.gmra.mxu0 %v845_v44  ;;  %886 = vmatmul.f32.vlgmr.msra.gmra.mxu1 %v845_v44 }
 0x3cf   :  { %906 = vmatmul.f32.vlgmr.msra.gmra.mxu2 %v845_v44  ;;  %926 = vmatmul.f32.vlgmr.msra.gmra.mxu3 %v845_v44 }
 0x3d0   :  { %1100 = vmatpush.msra.mxu0 %v1095_v54 }
 0x3d2   :  { %1101 = vmatpush.msra.mxu0 %v1094_v4 }
 0x3d4   :  { %1102 = vmatpush.msra.mxu0 %v1093_v5 }
 0x3d6   :  { %1103 = vmatpush.msra.mxu0 %v1092_v6 }
 0x3d8   :  { %1104 = vmatpush.msra.mxu0 %v1091_v7 }
 0x3da   :  { %1105 = vmatpush.msra.mxu0 %v1090_v8 }
 0x3dc   :  { %1106 = vmatpush.msra.mxu0 %v1089_v9 }
 0x3de   :  { %1107 = vmatpush.msra.mxu0 %v1088_v10 }
 0x3e0   :  { %1108 = vmatpush.msra.mxu0 %v1087_v11 }
 0x3e2   :  { %1109 = vmatpush.msra.mxu0 %v1086_v12 }
 0x3e4   :  { %1110 = vmatpush.msra.mxu0 %v1085_v13 }
 0x3e6   :  { %1111 = vmatpush.msra.mxu0 %v1084_v14 }
 0x3e8   :  { %1112 = vmatpush.msra.mxu0 %v1083_v15 }
 0x3ea   :  { %1113 = vmatpush.msra.mxu0 %v1082_v16 }
 0x3ec   :  { %1114 = vmatpush.msra.mxu0 %v1081_v17 }
 0x3ee   :  { %1115 = vmatpush.msra.mxu0 %v1080_v18 }
 0x44b   :  { %v867_v42 = vpop.f32.mrf.mxu0  ;;  %v887_v49 = vpop.f32.mrf.mxu1 }
 0x44c   :  { %v930_v40 = vadd.f32 %v867_v42, %v846_v47  ;;  %v931_v39 = vadd.f32 %v887_v49, %v847_v53 }
 0x44e   :  { %v934_v41 = vmul.f32 0.5, %v930_v40  ;;  %v935_v46 = vmul.f32 0.5, %v931_v39 }
 0x450   :  { %1251 = vtanh.f32 %v934_v41 }
 0x451   :  { %1253 = vtanh.f32 %v935_v46 }
 0x452   :  { %v907_v35 = vpop.f32.mrf.mxu2  ;;  %v927_v37 = vpop.f32.mrf.mxu3 }
 0x453   :  { %v932_v57 = vadd.f32 %v907_v35, %v848_v38  ;;  %v933_v56 = vadd.f32 %v927_v37, %v849_v36  ;;  %v1190_v37 = vld [vmem:[%s2331_s5] ss:$0 sm:$0xff] }
 0x455   :  { %1255 = vtanh.f32 %v932_v57  ;;  %v937_v50 = vmul.f32 0.5, %v933_v56 }
 0x456   :  { %v1252_v55 = vpop.eup %1251 }
 0x457   :  { %v1254_v60 = vpop.eup %1253  ;;  %v946_v59 = vmul.f32 0.5, %v1252_v55  ;;  %1257 = vtanh.f32 %v937_v50 }
 0x458   :  { %v947_v58 = vmul.f32 0.5, %v1254_v60 }
 0x459   :  { %v950_v48 = vadd.f32 0.5, %v946_v59 }
 0x45a   :  { %v951_v62 = vadd.f32 0.5, %v947_v58 }
 0x45b   :  { %v1256_v52 = vpop.eup %1255 }
 0x45c   :  { %v958_v63 = vmul.f32 %v951_v62, %v843_v32  ;;  %v959_v51 = vmul.f32 %v1256_v52, %v950_v48 }
 0x45d   :  { %v1258_v45 = vpop.eup %1257 }
 0x45e   :  { %v2261_v61 = vadd.f32 %v959_v51, %v958_v63  ;;  %v949_v0 = vmul.f32 0.5, %v1258_v45  ;;  %v1135_v45 = vld [vmem:[%s2332_s6] sm:$0xff] }
 0x460   :  { %1259 = vtanh.f32 %v2261_v61  ;;  %v953_v1 = vadd.f32 0.5, %v949_v0 }
 0x466   :  { %v1260_v2 = vpop.eup %1259 }
 0x467   :  { %v962_v3 = vmul.f32 %v1260_v2, %v953_v1  ;;  %v1411_v2 = vmov 4.0  }
 0x469   :  { %983 = vmatmul.f32.vlgmr.msrb.gmra.mxu0 %v962_v3  ;;  %1003 = vmatmul.f32.vlgmr.msrb.gmra.mxu1 %v962_v3 }
 0x46a   :  { %1023 = vmatmul.f32.vlgmr.msrb.gmra.mxu2 %v962_v3  ;;  %1043 = vmatmul.f32.vlgmr.msrb.gmra.mxu3 %v962_v3 }
 0x4e6   :  { %v984_v21 = vpop.f32.mrf.mxu0  ;;  %v1004_v22 = vpop.f32.mrf.mxu1 }
 0x4e7   :  { %v1047_v23 = vadd.f32 %v984_v21, %v963_v19  ;;  %v1048_v24 = vadd.f32 %v1004_v22, %v964_v20 }
 0x4e9   :  { %v1051_v25 = vmul.f32 0.5, %v1047_v23  ;;  %v1052_v26 = vmul.f32 0.5, %v1048_v24 }
 0x4eb   :  { %1261 = vtanh.f32 %v1051_v25 }
 0x4ec   :  { %1263 = vtanh.f32 %v1052_v26 }
 0x4ed   :  { %v1024_v29 = vpop.f32.mrf.mxu2  ;;  %v1044_v30 = vpop.f32.mrf.mxu3 }
 0x4ee   :  { %v1049_v31 = vadd.f32 %v1024_v29, %v965_v27  ;;  %v1050_v32 = vadd.f32 %v1044_v30, %v966_v28 }
 0x4f0   :  { %1265 = vtanh.f32 %v1049_v31  ;;  %v1054_v33 = vmul.f32 0.5, %v1050_v32 }
 0x4f1   :  { %v1262_v34 = vpop.eup %1261 }
 0x4f2   :  { %v1264_v43 = vpop.eup %1263  ;;  %v1063_v44 = vmul.f32 0.5, %v1262_v34  ;;  %1267 = vtanh.f32 %v1054_v33 }
 0x4f3   :  { %v1064_v47 = vmul.f32 0.5, %v1264_v43 }
 0x4f4   :  { %v1067_v53 = vadd.f32 0.5, %v1063_v44 }
 0x4f5   :  { %v1068_v54 = vadd.f32 0.5, %v1064_v47 }
 0x4f6   :  { %v1266_v42 = vpop.eup %1265 }
 0x4f7   :  { %v1075_v49 = vmul.f32 %v1068_v54, %v2261_v61  ;;  %v1076_v40 = vmul.f32 %v1266_v42, %v1067_v53 }
 0x4f8   :  { %v1268_v39 = vpop.eup %1267 }
 0x4f9   :  { %v1077_v41 = vadd.f32 %v1076_v40, %v1075_v49  ;;  %v1066_v46 = vmul.f32 0.5, %v1268_v39 }
 0x4fb   :  { %1269 = vtanh.f32 %v1077_v41  ;;  %v1070_v38 = vadd.f32 0.5, %v1066_v46 }
 0x501   :  { %v1270_v36 = vpop.eup %1269 }
 0x502   :  { %v1079_v35 = vmul.f32 %v1270_v36, %v1070_v38 }
 0x504   :  { %1116 = vmatmul.f32.vlgmr.msra.gmra.mxu0 %v1079_v35 }
 0x581   :  { %v1117_v57 = vpop.f32.mrf.mxu0 }
 0x582   :  { %v1118_v56 = vadd.f32 %v1190_v37, %v1117_v57 }
 0x584   :  { %v1121_v50 = vsel %vm1120_vm0, %v1118_v56, -inf }
 0x585   :  { %1122 = vmax.xlane.f32.xlu0 %v1121_v50 }
 0x5f8   :  { %v1123_v55 = vpop.xlane.xlu0 %1122 }
 0x5f9   :  { %v1124_v60 = vsub.f32 %v1118_v56, %v1123_v55 }
 0x5fb   :  { %v1125_v59 = vmul.f32 1.442695, %v1124_v60 }
 0x5fd   :  { %1271 = vpow2.f32 %v1125_v59 }
 0x603   :  { %v1272_v58 = vpop.eup %1271 }
 0x604   :  { %v1127_v48 = vsel %vm1120_vm0, %v1272_v58, 0.0 }
 0x605   :  { %1128 = vadd.xlane.f32.xlu0 %v1127_v48 }
 0x678   :  { %v1129_v62 = vpop.xlane.xlu0 %1128 }
 0x679   :  { %1273 = vlog2.f32 %v1129_v62 }
 0x67a   :  { %1275 = vrcp.f32 %v1411_v2 }
 0x67f   :  { %v1274_v52 = vpop.eup %1273 }
 0x680   :  { %v1131_v63 = vmul.f32 0.6931472, %v1274_v52  ;;  %v1276_v3 = vpop.eup %1275 }
 0x681   :  { %v1149_v4 = vmul.f32 4.0, %v1276_v3  ;;  %vm1153_vm1 = vweird.f32 %v1276_v3 }
 0x682   :  { %v1132_v51 = vadd.f32 %v1131_v63, %v1123_v55 }
 0x683   :  { %v1150_v5 = vsub.f32 1.0, %v1149_v4 }
 0x684   :  { %v1133_v61 = vsub.f32 %v1118_v56, %v1132_v51 }
 0x685   :  { %v1151_v9 = vmul.f32 %v1276_v3, %v1150_v5 }
 0x686   :  { %v1136_v0 = vmul.f32 %v1135_v45, %v1133_v61  ;;  %1134 = vst.msk [vmem:[%s2333_s7] sm:$0xff] %vm1120_vm0, %v1133_v61 }
 0x687   :  { %v1152_v12 = vadd.f32 %v1276_v3, %v1151_v9 }
 0x688   :  { %v1137_v1 = vsel %vm1120_vm0, %v1136_v0, 0.0 }
 0x689   :  { %1138 = vadd.xlane.f32.xlu1 %v1137_v1  ;;  %v1154_v15 = vsel %vm1153_vm1, %v1276_v3, %v1152_v12 }
 0x6fc   :  { %v1139_v6 = vpop.xlane.xlu1 %1138 }
 0x6fd   :  { %v1140_v7 = vrot.slane %v1139_v6, 4 }
 0x6ff   :  { %v1141_v8 = vadd.f32 %v1140_v7, %v1139_v6 }
 0x701   :  { %v1142_v10 = vrot.slane %v1141_v8, 2 }
 0x703   :  { %v1143_v11 = vadd.f32 %v1142_v10, %v1141_v8 }
 0x705   :  { %v1144_v13 = vrot.slane %v1143_v11, 1 }
 0x707   :  { %v1145_v14 = vadd.f32 %v1144_v13, %v1143_v11 }
 0x709   :  { %1180 = vpush %v1145_v14 }
 0x70a   :  { %1182 = vpush %v1154_v15 }
 0x73a   :  { %s1181_s28 = spop %1180 }
 0x73b   :  { %s1147_s29 = ssub.f32 0.0, %s1181_s28  ;;  %s1183_s30 = spop %1182 }
 0x73d   :  { %s1156_s9 = smul.f32 %s1183_s30, %s1147_s29 }
 0x73f   :  { %1158 = sst [smem:[#allocation7]] %s1156_s9 }
 0x740   :  { %1169 = dma.smem_to_hbm %s1412_s10, 16, %s1167_s27, [#allocation4]  }
 0x741   :  { %1405 = dma.done.wait [#allocation4], 16  }
 0x742   :  { %1406 = vsyncadd [#allocation4], 4294967280 }
 0x743   :  { %1176 = sfence }
 0x744   :  { %1177 = vsyncpa [#allocation3], 1 }
 0x745   :  { %1178 = vsyncpa [#allocation6], 1 }
 0x746   :  { %1179 = vsyncpa [#allocation4], 1 }

</bundles_post_ra>
